<compile_context>
chip_gen: v7x
topology: tpu7x:2x2x1
jax: 0.10.0
libtpu: 0.0.40
codegen_flags: <defaults>
</compile_context>

<pallas_src>
import jax
import jax.numpy as jnp
import numpy as np
from jax.experimental import pallas as pl
from jax.experimental.pallas import tpu as pltpu

DIM = 32          # hidden dim ("dim" in the PyTorch module)
NUM_LAYERS = 5    # num_gc_layers in the InfoGraph-style Encoder
NUM_CLASSES = 3   # dataset.num_classes (synthetic)
NUM_FEATURES = 1  # fallback branch in __init__ (x is None -> ones)
CLASS_PAD = 128   # lane-dense padded logits width (sliced back to NUM_CLASSES)
NEG_PAD = -1e30   # bias for padded (invalid) class columns


def net_kernel(a_ref, x_ref, w1_ref, b1_ref, w2_ref, b2_ref,
               p_ref, wf1_ref, bf1_ref, wf2_ref, bf2_ref, out_ref):
    """Fused GIN encoder + MLP head + log_softmax for one graph block.

    a_ref:   [Nb, Nb]          bf16  block-diagonal tile of A + I (GIN eps=0)
    x_ref:   [Nb, DIM]         f32   node features (zero-padded from NUM_FEATURES)
    w1_ref:  [L, DIM, DIM]     bf16  first Linear of each GIN MLP (layer-0 padded)
    b1_ref:  [L, DIM]          f32
    w2_ref:  [L, DIM, DIM]     bf16  second Linear of each GIN MLP
    b2_ref:  [L, DIM]          f32
    p_ref:   [Gb, Nb]          f32   global_add_pool rows for this block
    wf1_ref: [L, DIM, DIM]     bf16  fc1 weight split per encoder layer
    bf1_ref: [1, DIM]          f32
    wf2_ref: [DIM, CLASS_PAD]  bf16  (zero-padded columns)
    bf2_ref: [1, CLASS_PAD]    f32   (-1e30 on padded columns)
    out_ref: [Gb, CLASS_PAD]   f32   log-probabilities (valid cols = first 3)
    """
    n_blk = a_ref.shape[0]
    a_bf = a_ref[...]
    # single f32 -> bf16 cast per layer, reused for both (A+I)@h and h@Wf1[l]
    h_bf = x_ref[...].astype(jnp.bfloat16)
    # node-space fc1 accumulator: acc_n = sum_l h_l @ Wf1[l]  (pooling hoisted)
    acc_n = jnp.zeros((n_blk, DIM), jnp.float32)

    for l in range(NUM_LAYERS):                       # fully unrolled (5)
        # GINConv (eps=0): (A + I) @ H  -- +I was folded on the host.
        agg = jnp.dot(a_bf, h_bf, preferred_element_type=jnp.float32)
        # MLP: Linear -> ReLU -> Linear (bf16 MXU operands, f32 accumulate).
        t = jnp.dot(agg.astype(jnp.bfloat16), w1_ref[l],
                    preferred_element_type=jnp.float32) + b1_ref[l:l + 1, :]
        t = jnp.maximum(t, 0.0)
        t = jnp.dot(t.astype(jnp.bfloat16), w2_ref[l],
                    preferred_element_type=jnp.float32) + b2_ref[l:l + 1, :]
        # Encoder ReLU; BatchNorm in eval mode with default running stats
        # (mean=0, var=1, gamma=1, beta=0) is the identity.
        h_bf = jnp.maximum(t, 0.0).astype(jnp.bfloat16)
        # fc1 contribution in node space (off the h dependency chain):
        #   concat(z_0..z_4) @ Wf1 == P @ (sum_l h_l @ Wf1[l])
        acc_n = acc_n + jnp.dot(h_bf, wf1_ref[l],
                                preferred_element_type=jnp.float32)

    # Apply the pooling matrix exactly once (epilogue).
    acc = jnp.dot(p_ref[...].astype(jnp.bfloat16), acc_n.astype(jnp.bfloat16),
                  preferred_element_type=jnp.float32)

    # Head: relu(fc1) -> dropout (eval mode == identity) -> fc2 -> log_softmax
    z = jnp.maximum(acc + bf1_ref[...], 0.0)
    logits = jnp.dot(z.astype(jnp.bfloat16), wf2_ref[...],
                     preferred_element_type=jnp.float32) + bf2_ref[...]
    m = jnp.max(logits, axis=-1, keepdims=True)
    s = jnp.sum(jnp.exp(logits - m), axis=-1, keepdims=True)
    out_ref[...] = logits - m - jnp.log(s)


def net_forward(a_plus_i, x_pad, prepped, p_f32, *,
                nodes_per_block, graphs_per_block):
    n_total = a_plus_i.shape[0]
    g_total = p_f32.shape[0]
    assert n_total % nodes_per_block == 0
    assert g_total % graphs_per_block == 0
    num_blocks = n_total // nodes_per_block
    assert g_total // graphs_per_block == num_blocks, \
        "graph blocks and node blocks must line up"

    w1s, b1s, w2s, b2s, wf1_l, bf1, wf2_pad, bf2_pad = prepped

    in_specs = [
        # block-diagonal adjacency tile (graphs never connect across blocks)
        pl.BlockSpec((nodes_per_block, nodes_per_block), lambda i: (i, i)),
        pl.BlockSpec((nodes_per_block, DIM), lambda i: (i, 0)),
        # weights: constant index_map -> stay resident across grid steps
        pl.BlockSpec((NUM_LAYERS, DIM, DIM), lambda i: (0, 0, 0)),
        pl.BlockSpec((NUM_LAYERS, DIM), lambda i: (0, 0)),
        pl.BlockSpec((NUM_LAYERS, DIM, DIM), lambda i: (0, 0, 0)),
        pl.BlockSpec((NUM_LAYERS, DIM), lambda i: (0, 0)),
        pl.BlockSpec((graphs_per_block, nodes_per_block), lambda i: (i, i)),
        pl.BlockSpec((NUM_LAYERS, DIM, DIM), lambda i: (0, 0, 0)),
        pl.BlockSpec((1, DIM), lambda i: (0, 0)),
        pl.BlockSpec((DIM, CLASS_PAD), lambda i: (0, 0)),
        pl.BlockSpec((1, CLASS_PAD), lambda i: (0, 0)),
    ]
    out_specs = pl.BlockSpec((graphs_per_block, CLASS_PAD), lambda i: (i, 0))

    out_pad = pl.pallas_call(
        net_kernel,
        out_shape=jax.ShapeDtypeStruct((g_total, CLASS_PAD), jnp.float32),
        grid=(num_blocks,),
        in_specs=in_specs,
        out_specs=out_specs,
        compiler_params=pltpu.CompilerParams(
            # independent graph blocks -> shard across both TCs on v7x
            dimension_semantics=("parallel",)),
    )(a_plus_i, x_pad, w1s, b1s, w2s, b2s, p_f32, wf1_l, bf1, wf2_pad, bf2_pad)

    # slice lane-dense padded logits back to the logical class width
    return out_pad[:, :NUM_CLASSES]


def reference_forward(a_plus_i, x_pad, prepped, p_f32):
    """Pure-JAX reference with the same precision policy (bf16 MXU operands,
    f32 accumulation, hoisted pooling) for correctness checking."""
    w1s, b1s, w2s, b2s, wf1_l, bf1, wf2_pad, bf2_pad = prepped
    h_bf = x_pad.astype(jnp.bfloat16)
    acc_n = jnp.zeros((x_pad.shape[0], DIM), jnp.float32)
    for l in range(NUM_LAYERS):
        agg = jnp.dot(a_plus_i, h_bf, preferred_element_type=jnp.float32)
        t = jnp.dot(agg.astype(jnp.bfloat16), w1s[l],
                    preferred_element_type=jnp.float32) + b1s[l]
        t = jnp.maximum(t, 0.0)
        t = jnp.dot(t.astype(jnp.bfloat16), w2s[l],
                    preferred_element_type=jnp.float32) + b2s[l]
        h_bf = jnp.maximum(t, 0.0).astype(jnp.bfloat16)
        acc_n = acc_n + jnp.dot(h_bf, wf1_l[l],
                                preferred_element_type=jnp.float32)
    acc = jnp.dot(p_f32.astype(jnp.bfloat16), acc_n.astype(jnp.bfloat16),
                  preferred_element_type=jnp.float32)
    z = jnp.maximum(acc + bf1, 0.0)
    logits = jnp.dot(z.astype(jnp.bfloat16), wf2_pad,
                     preferred_element_type=jnp.float32) + bf2_pad
    return jax.nn.log_softmax(logits, axis=-1)[:, :NUM_CLASSES]


def init_params(key):
    keys = jax.random.split(key, 4 * NUM_LAYERS + 4)
    w1s, b1s, w2s, b2s = [], [], [], []
    for l in range(NUM_LAYERS):
        in_dim = NUM_FEATURES if l == 0 else DIM
        w1 = jax.random.normal(keys[4 * l + 0], (in_dim, DIM),
                               dtype=jnp.float32) * 0.1
        # pad layer-0 input dim up to DIM (matches zero-padded x columns)
        w1 = jnp.pad(w1, ((0, DIM - in_dim), (0, 0)))
        b1 = jax.random.normal(keys[4 * l + 1], (DIM,), dtype=jnp.float32) * 0.1
        w2 = jax.random.normal(keys[4 * l + 2], (DIM, DIM),
                               dtype=jnp.float32) * 0.1
        b2 = jax.random.normal(keys[4 * l + 3], (DIM,), dtype=jnp.float32) * 0.1
        w1s.append(w1); b1s.append(b1); w2s.append(w2); b2s.append(b2)
    w1s = jnp.stack(w1s); b1s = jnp.stack(b1s)
    w2s = jnp.stack(w2s); b2s = jnp.stack(b2s)
    wf1 = jax.random.normal(keys[-4], (NUM_LAYERS * DIM, DIM),
                            dtype=jnp.float32) * 0.1
    bf1 = jax.random.normal(keys[-3], (1, DIM), dtype=jnp.float32) * 0.1
    wf2 = jax.random.normal(keys[-2], (DIM, NUM_CLASSES),
                            dtype=jnp.float32) * 0.1
    bf2 = jax.random.normal(keys[-1], (1, NUM_CLASSES), dtype=jnp.float32) * 0.1
    return (w1s, b1s, w2s, b2s, wf1, bf1, wf2, bf2)


def prepare_params(params):
    """Host-side prep: bf16 weights, fc1 split per encoder layer, lane-dense
    padded fc2 (zero weight cols, -1e30 bias) so the kernel output stays
    full-lane and unmasked."""
    w1s, b1s, w2s, b2s, wf1, bf1, wf2, bf2 = params
    wf1_l = wf1.reshape(NUM_LAYERS, DIM, DIM).astype(jnp.bfloat16)
    wf2_pad = jnp.pad(
        wf2, ((0, 0), (0, CLASS_PAD - NUM_CLASSES))).astype(jnp.bfloat16)
    bf2_pad = jnp.pad(bf2, ((0, 0), (0, CLASS_PAD - NUM_CLASSES)),
                      constant_values=NEG_PAD)
    return (w1s.astype(jnp.bfloat16), b1s,
            w2s.astype(jnp.bfloat16), b2s,
            wf1_l, bf1, wf2_pad, bf2_pad)


if __name__ == "__main__":
    key = jax.random.PRNGKey(0)
    params = init_params(key)
    prepped = prepare_params(params)

    # Synthetic graph batch: 16 graphs x 16 nodes each (ring topology, both
    # directions) -> 256 nodes total. Grid: 2 graph blocks of 8 graphs / 128
    # nodes each (output blocks are full 8-sublane stores; blocks are MXU- and
    # lane-aligned; independent blocks run on both TCs on v7x).
    N_PER = 16          # nodes per graph
    G = 16              # number of graphs (multiple of 8)
    GRAPHS_PER_BLOCK = 8
    NODES_PER_BLOCK = GRAPHS_PER_BLOCK * N_PER   # 128 (lane-aligned)
    N = G * N_PER                                 # 256 nodes total

    batch = jnp.repeat(jnp.arange(G, dtype=jnp.int32), N_PER)   # node -> graph
    src_list, dst_list = [], []
    for g in range(G):
        base = g * N_PER
        for i in range(N_PER):
            a_node, b_node = base + i, base + (i + 1) % N_PER
            src_list += [a_node, b_node]
            dst_list += [b_node, a_node]
    edge_index = jnp.array([src_list, dst_list], dtype=jnp.int32)  # [2, E]

    # x is None in the PyTorch forward -> x = ones(num_nodes) (1 feature).
    x = jnp.ones((N, NUM_FEATURES), dtype=jnp.float32)
    x_pad = jnp.pad(x, ((0, 0), (0, DIM - NUM_FEATURES)))          # [N, DIM]

    # Dense adjacency A[i, j] = 1 iff edge j -> i; fold +I (GIN eps=0) here.
    a = jnp.zeros((N, N), dtype=jnp.float32).at[
        edge_index[1], edge_index[0]].add(1.0)
    a_plus_i = (a + jnp.eye(N, dtype=jnp.float32)).astype(jnp.bfloat16)

    # global_add_pool matrix: P[g, n] = 1 iff node n belongs to graph g.
    p_f32 = (batch[None, :] == jnp.arange(G)[:, None]).astype(jnp.float32)

    out = net_forward(a_plus_i, x_pad, prepped, p_f32,
                      nodes_per_block=NODES_PER_BLOCK,
                      graphs_per_block=GRAPHS_PER_BLOCK)
    out = jax.block_until_ready(out)

    ref = reference_forward(a_plus_i, x_pad, prepped, p_f32)
    np.testing.assert_allclose(np.asarray(out), np.asarray(ref),
                               rtol=1e-3, atol=1e-3)
    assert out.shape == (G, NUM_CLASSES)
    print("KERNEL_OK")
</pallas_src>

<mosaic_0001>
module attributes {stable_mosaic.version = 11 : i64} {
  func.func @net_kernel(%arg0: i32, %arg1: memref<128x128xbf16, #tpu.memory_space<vmem>>, %arg2: memref<128x32xf32, #tpu.memory_space<vmem>>, %arg3: memref<5x32x32xbf16, #tpu.memory_space<vmem>>, %arg4: memref<5x32xf32, #tpu.memory_space<vmem>>, %arg5: memref<5x32x32xbf16, #tpu.memory_space<vmem>>, %arg6: memref<5x32xf32, #tpu.memory_space<vmem>>, %arg7: memref<8x128xf32, #tpu.memory_space<vmem>>, %arg8: memref<5x32x32xbf16, #tpu.memory_space<vmem>>, %arg9: memref<1x32xf32, #tpu.memory_space<vmem>>, %arg10: memref<32x128xbf16, #tpu.memory_space<vmem>>, %arg11: memref<1x128xf32, #tpu.memory_space<vmem>>, %arg12: memref<8x128xf32, #tpu.memory_space<vmem>>) attributes {dimension_semantics = [#tpu.dimension_semantics<parallel>], iteration_bounds = array<i64: 2>, scalar_prefetch = 0 : i64, scratch_operands = 0 : i64, tpu.core_type = #tpu.core_type<tc>, window_params = [{transform_indices = @transform_0, window_bounds = array<i64: 128, 128>}, {transform_indices = @transform_1, window_bounds = array<i64: 128, 32>}, {pipeline_mode = #tpu.pipeline_mode<synchronous>, transform_indices = @transform_2, window_bounds = array<i64: 5, 32, 32>}, {pipeline_mode = #tpu.pipeline_mode<synchronous>, transform_indices = @transform_3, window_bounds = array<i64: 5, 32>}, {pipeline_mode = #tpu.pipeline_mode<synchronous>, transform_indices = @transform_4, window_bounds = array<i64: 5, 32, 32>}, {pipeline_mode = #tpu.pipeline_mode<synchronous>, transform_indices = @transform_5, window_bounds = array<i64: 5, 32>}, {transform_indices = @transform_6, window_bounds = array<i64: 8, 128>}, {pipeline_mode = #tpu.pipeline_mode<synchronous>, transform_indices = @transform_7, window_bounds = array<i64: 5, 32, 32>}, {pipeline_mode = #tpu.pipeline_mode<synchronous>, transform_indices = @transform_8, window_bounds = array<i64: 1, 32>}, {pipeline_mode = #tpu.pipeline_mode<synchronous>, transform_indices = @transform_9, window_bounds = array<i64: 32, 128>}, {pipeline_mode = #tpu.pipeline_mode<synchronous>, transform_indices = @transform_10, window_bounds = array<i64: 1, 128>}, {transform_indices = @transform_11, window_bounds = array<i64: 8, 128>}]} {
    %c0 = arith.constant 0 : index
    %c0_0 = arith.constant 0 : index
    %0 = vector.load %arg1[%c0, %c0_0] : memref<128x128xbf16, #tpu.memory_space<vmem>>, vector<128x128xbf16>
    %c0_1 = arith.constant 0 : index
    %c0_2 = arith.constant 0 : index
    %1 = vector.load %arg2[%c0_1, %c0_2] : memref<128x32xf32, #tpu.memory_space<vmem>>, vector<128x32xf32>
    %2 = arith.truncf %1 : vector<128x32xf32> to vector<128x32xbf16>
    %cst = arith.constant 0.000000e+00 : f32
    %3 = vector.broadcast %cst : f32 to vector<128x32xf32>
    %cst_3 = arith.constant dense<0.000000e+00> : vector<128x32xf32>
    %4 = tpu.matmul %0, %2, %cst_3 {dimension_numbers = #tpu.dot_dimension_numbers<[1], [0], [0], [1], [0, 0, 1, 1], [], []>} : vector<128x128xbf16>, vector<128x32xbf16>, vector<128x32xf32> -> vector<128x32xf32>
    %5 = arith.truncf %4 : vector<128x32xf32> to vector<128x32xbf16>
    %c0_4 = arith.constant 0 : index
    %c0_5 = arith.constant 0 : index
    %c0_6 = arith.constant 0 : index
    %6 = vector.load %arg3[%c0_4, %c0_5, %c0_6] : memref<5x32x32xbf16, #tpu.memory_space<vmem>>, vector<1x32x32xbf16>
    %7 = vector.shape_cast %6 : vector<1x32x32xbf16> to vector<32x32xbf16>
    %cst_7 = arith.constant dense<0.000000e+00> : vector<128x32xf32>
    %8 = tpu.matmul %5, %7, %cst_7 {dimension_numbers = #tpu.dot_dimension_numbers<[1], [0], [0], [1], [0, 0, 1, 1], [], []>} : vector<128x32xbf16>, vector<32x32xbf16>, vector<128x32xf32> -> vector<128x32xf32>
    %c0_8 = arith.constant 0 : index
    %c0_9 = arith.constant 0 : index
    %9 = vector.load %arg4[%c0_8, %c0_9] : memref<5x32xf32, #tpu.memory_space<vmem>>, vector<1x32xf32>
    %10 = vector.broadcast %9 : vector<1x32xf32> to vector<128x32xf32>
    %11 = arith.addf %8, %10 : vector<128x32xf32>
    %cst_10 = arith.constant 0.000000e+00 : f32
    %12 = vector.broadcast %cst_10 : f32 to vector<128x32xf32>
    %13 = arith.maximumf %11, %12 : vector<128x32xf32>
    %14 = arith.truncf %13 : vector<128x32xf32> to vector<128x32xbf16>
    %c0_11 = arith.constant 0 : index
    %c0_12 = arith.constant 0 : index
    %c0_13 = arith.constant 0 : index
    %15 = vector.load %arg5[%c0_11, %c0_12, %c0_13] : memref<5x32x32xbf16, #tpu.memory_space<vmem>>, vector<1x32x32xbf16>
    %16 = vector.shape_cast %15 : vector<1x32x32xbf16> to vector<32x32xbf16>
    %cst_14 = arith.constant dense<0.000000e+00> : vector<128x32xf32>
    %17 = tpu.matmul %14, %16, %cst_14 {dimension_numbers = #tpu.dot_dimension_numbers<[1], [0], [0], [1], [0, 0, 1, 1], [], []>} : vector<128x32xbf16>, vector<32x32xbf16>, vector<128x32xf32> -> vector<128x32xf32>
    %c0_15 = arith.constant 0 : index
    %c0_16 = arith.constant 0 : index
    %18 = vector.load %arg6[%c0_15, %c0_16] : memref<5x32xf32, #tpu.memory_space<vmem>>, vector<1x32xf32>
    %19 = vector.broadcast %18 : vector<1x32xf32> to vector<128x32xf32>
    %20 = arith.addf %17, %19 : vector<128x32xf32>
    %cst_17 = arith.constant 0.000000e+00 : f32
    %21 = vector.broadcast %cst_17 : f32 to vector<128x32xf32>
    %22 = arith.maximumf %20, %21 : vector<128x32xf32>
    %23 = arith.truncf %22 : vector<128x32xf32> to vector<128x32xbf16>
    %c0_18 = arith.constant 0 : index
    %c0_19 = arith.constant 0 : index
    %c0_20 = arith.constant 0 : index
    %24 = vector.load %arg8[%c0_18, %c0_19, %c0_20] : memref<5x32x32xbf16, #tpu.memory_space<vmem>>, vector<1x32x32xbf16>
    %25 = vector.shape_cast %24 : vector<1x32x32xbf16> to vector<32x32xbf16>
    %cst_21 = arith.constant dense<0.000000e+00> : vector<128x32xf32>
    %26 = tpu.matmul %23, %25, %cst_21 {dimension_numbers = #tpu.dot_dimension_numbers<[1], [0], [0], [1], [0, 0, 1, 1], [], []>} : vector<128x32xbf16>, vector<32x32xbf16>, vector<128x32xf32> -> vector<128x32xf32>
    %27 = arith.addf %3, %26 : vector<128x32xf32>
    %cst_22 = arith.constant dense<0.000000e+00> : vector<128x32xf32>
    %28 = tpu.matmul %0, %23, %cst_22 {dimension_numbers = #tpu.dot_dimension_numbers<[1], [0], [0], [1], [0, 0, 1, 1], [], []>} : vector<128x128xbf16>, vector<128x32xbf16>, vector<128x32xf32> -> vector<128x32xf32>
    %29 = arith.truncf %28 : vector<128x32xf32> to vector<128x32xbf16>
    %c1 = arith.constant 1 : index
    %c0_23 = arith.constant 0 : index
    %c0_24 = arith.constant 0 : index
    %30 = vector.load %arg3[%c1, %c0_23, %c0_24] : memref<5x32x32xbf16, #tpu.memory_space<vmem>>, vector<1x32x32xbf16>
    %31 = vector.shape_cast %30 : vector<1x32x32xbf16> to vector<32x32xbf16>
    %cst_25 = arith.constant dense<0.000000e+00> : vector<128x32xf32>
    %32 = tpu.matmul %29, %31, %cst_25 {dimension_numbers = #tpu.dot_dimension_numbers<[1], [0], [0], [1], [0, 0, 1, 1], [], []>} : vector<128x32xbf16>, vector<32x32xbf16>, vector<128x32xf32> -> vector<128x32xf32>
    %c1_26 = arith.constant 1 : index
    %c0_27 = arith.constant 0 : index
    %33 = vector.load %arg4[%c1_26, %c0_27] : memref<5x32xf32, #tpu.memory_space<vmem>>, vector<1x32xf32>
    %34 = vector.broadcast %33 : vector<1x32xf32> to vector<128x32xf32>
    %35 = arith.addf %32, %34 : vector<128x32xf32>
    %cst_28 = arith.constant 0.000000e+00 : f32
    %36 = vector.broadcast %cst_28 : f32 to vector<128x32xf32>
    %37 = arith.maximumf %35, %36 : vector<128x32xf32>
    %38 = arith.truncf %37 : vector<128x32xf32> to vector<128x32xbf16>
    %c1_29 = arith.constant 1 : index
    %c0_30 = arith.constant 0 : index
    %c0_31 = arith.constant 0 : index
    %39 = vector.load %arg5[%c1_29, %c0_30, %c0_31] : memref<5x32x32xbf16, #tpu.memory_space<vmem>>, vector<1x32x32xbf16>
    %40 = vector.shape_cast %39 : vector<1x32x32xbf16> to vector<32x32xbf16>
    %cst_32 = arith.constant dense<0.000000e+00> : vector<128x32xf32>
    %41 = tpu.matmul %38, %40, %cst_32 {dimension_numbers = #tpu.dot_dimension_numbers<[1], [0], [0], [1], [0, 0, 1, 1], [], []>} : vector<128x32xbf16>, vector<32x32xbf16>, vector<128x32xf32> -> vector<128x32xf32>
    %c1_33 = arith.constant 1 : index
    %c0_34 = arith.constant 0 : index
    %42 = vector.load %arg6[%c1_33, %c0_34] : memref<5x32xf32, #tpu.memory_space<vmem>>, vector<1x32xf32>
    %43 = vector.broadcast %42 : vector<1x32xf32> to vector<128x32xf32>
    %44 = arith.addf %41, %43 : vector<128x32xf32>
    %cst_35 = arith.constant 0.000000e+00 : f32
    %45 = vector.broadcast %cst_35 : f32 to vector<128x32xf32>
    %46 = arith.maximumf %44, %45 : vector<128x32xf32>
    %47 = arith.truncf %46 : vector<128x32xf32> to vector<128x32xbf16>
    %c1_36 = arith.constant 1 : index
    %c0_37 = arith.constant 0 : index
    %c0_38 = arith.constant 0 : index
    %48 = vector.load %arg8[%c1_36, %c0_37, %c0_38] : memref<5x32x32xbf16, #tpu.memory_space<vmem>>, vector<1x32x32xbf16>
    %49 = vector.shape_cast %48 : vector<1x32x32xbf16> to vector<32x32xbf16>
    %cst_39 = arith.constant dense<0.000000e+00> : vector<128x32xf32>
    %50 = tpu.matmul %47, %49, %cst_39 {dimension_numbers = #tpu.dot_dimension_numbers<[1], [0], [0], [1], [0, 0, 1, 1], [], []>} : vector<128x32xbf16>, vector<32x32xbf16>, vector<128x32xf32> -> vector<128x32xf32>
    %51 = arith.addf %27, %50 : vector<128x32xf32>
    %cst_40 = arith.constant dense<0.000000e+00> : vector<128x32xf32>
    %52 = tpu.matmul %0, %47, %cst_40 {dimension_numbers = #tpu.dot_dimension_numbers<[1], [0], [0], [1], [0, 0, 1, 1], [], []>} : vector<128x128xbf16>, vector<128x32xbf16>, vector<128x32xf32> -> vector<128x32xf32>
    %53 = arith.truncf %52 : vector<128x32xf32> to vector<128x32xbf16>
    %c2 = arith.constant 2 : index
    %c0_41 = arith.constant 0 : index
    %c0_42 = arith.constant 0 : index
    %54 = vector.load %arg3[%c2, %c0_41, %c0_42] : memref<5x32x32xbf16, #tpu.memory_space<vmem>>, vector<1x32x32xbf16>
    %55 = vector.shape_cast %54 : vector<1x32x32xbf16> to vector<32x32xbf16>
    %cst_43 = arith.constant dense<0.000000e+00> : vector<128x32xf32>
    %56 = tpu.matmul %53, %55, %cst_43 {dimension_numbers = #tpu.dot_dimension_numbers<[1], [0], [0], [1], [0, 0, 1, 1], [], []>} : vector<128x32xbf16>, vector<32x32xbf16>, vector<128x32xf32> -> vector<128x32xf32>
    %c2_44 = arith.constant 2 : index
    %c0_45 = arith.constant 0 : index
    %57 = vector.load %arg4[%c2_44, %c0_45] : memref<5x32xf32, #tpu.memory_space<vmem>>, vector<1x32xf32>
    %58 = vector.broadcast %57 : vector<1x32xf32> to vector<128x32xf32>
    %59 = arith.addf %56, %58 : vector<128x32xf32>
    %cst_46 = arith.constant 0.000000e+00 : f32
    %60 = vector.broadcast %cst_46 : f32 to vector<128x32xf32>
    %61 = arith.maximumf %59, %60 : vector<128x32xf32>
    %62 = arith.truncf %61 : vector<128x32xf32> to vector<128x32xbf16>
    %c2_47 = arith.constant 2 : index
    %c0_48 = arith.constant 0 : index
    %c0_49 = arith.constant 0 : index
    %63 = vector.load %arg5[%c2_47, %c0_48, %c0_49] : memref<5x32x32xbf16, #tpu.memory_space<vmem>>, vector<1x32x32xbf16>
    %64 = vector.shape_cast %63 : vector<1x32x32xbf16> to vector<32x32xbf16>
    %cst_50 = arith.constant dense<0.000000e+00> : vector<128x32xf32>
    %65 = tpu.matmul %62, %64, %cst_50 {dimension_numbers = #tpu.dot_dimension_numbers<[1], [0], [0], [1], [0, 0, 1, 1], [], []>} : vector<128x32xbf16>, vector<32x32xbf16>, vector<128x32xf32> -> vector<128x32xf32>
    %c2_51 = arith.constant 2 : index
    %c0_52 = arith.constant 0 : index
    %66 = vector.load %arg6[%c2_51, %c0_52] : memref<5x32xf32, #tpu.memory_space<vmem>>, vector<1x32xf32>
    %67 = vector.broadcast %66 : vector<1x32xf32> to vector<128x32xf32>
    %68 = arith.addf %65, %67 : vector<128x32xf32>
    %cst_53 = arith.constant 0.000000e+00 : f32
    %69 = vector.broadcast %cst_53 : f32 to vector<128x32xf32>
    %70 = arith.maximumf %68, %69 : vector<128x32xf32>
    %71 = arith.truncf %70 : vector<128x32xf32> to vector<128x32xbf16>
    %c2_54 = arith.constant 2 : index
    %c0_55 = arith.constant 0 : index
    %c0_56 = arith.constant 0 : index
    %72 = vector.load %arg8[%c2_54, %c0_55, %c0_56] : memref<5x32x32xbf16, #tpu.memory_space<vmem>>, vector<1x32x32xbf16>
    %73 = vector.shape_cast %72 : vector<1x32x32xbf16> to vector<32x32xbf16>
    %cst_57 = arith.constant dense<0.000000e+00> : vector<128x32xf32>
    %74 = tpu.matmul %71, %73, %cst_57 {dimension_numbers = #tpu.dot_dimension_numbers<[1], [0], [0], [1], [0, 0, 1, 1], [], []>} : vector<128x32xbf16>, vector<32x32xbf16>, vector<128x32xf32> -> vector<128x32xf32>
    %75 = arith.addf %51, %74 : vector<128x32xf32>
    %cst_58 = arith.constant dense<0.000000e+00> : vector<128x32xf32>
    %76 = tpu.matmul %0, %71, %cst_58 {dimension_numbers = #tpu.dot_dimension_numbers<[1], [0], [0], [1], [0, 0, 1, 1], [], []>} : vector<128x128xbf16>, vector<128x32xbf16>, vector<128x32xf32> -> vector<128x32xf32>
    %77 = arith.truncf %76 : vector<128x32xf32> to vector<128x32xbf16>
    %c3 = arith.constant 3 : index
    %c0_59 = arith.constant 0 : index
    %c0_60 = arith.constant 0 : index
    %78 = vector.load %arg3[%c3, %c0_59, %c0_60] : memref<5x32x32xbf16, #tpu.memory_space<vmem>>, vector<1x32x32xbf16>
    %79 = vector.shape_cast %78 : vector<1x32x32xbf16> to vector<32x32xbf16>
    %cst_61 = arith.constant dense<0.000000e+00> : vector<128x32xf32>
    %80 = tpu.matmul %77, %79, %cst_61 {dimension_numbers = #tpu.dot_dimension_numbers<[1], [0], [0], [1], [0, 0, 1, 1], [], []>} : vector<128x32xbf16>, vector<32x32xbf16>, vector<128x32xf32> -> vector<128x32xf32>
    %c3_62 = arith.constant 3 : index
    %c0_63 = arith.constant 0 : index
    %81 = vector.load %arg4[%c3_62, %c0_63] : memref<5x32xf32, #tpu.memory_space<vmem>>, vector<1x32xf32>
    %82 = vector.broadcast %81 : vector<1x32xf32> to vector<128x32xf32>
    %83 = arith.addf %80, %82 : vector<128x32xf32>
    %cst_64 = arith.constant 0.000000e+00 : f32
    %84 = vector.broadcast %cst_64 : f32 to vector<128x32xf32>
    %85 = arith.maximumf %83, %84 : vector<128x32xf32>
    %86 = arith.truncf %85 : vector<128x32xf32> to vector<128x32xbf16>
    %c3_65 = arith.constant 3 : index
    %c0_66 = arith.constant 0 : index
    %c0_67 = arith.constant 0 : index
    %87 = vector.load %arg5[%c3_65, %c0_66, %c0_67] : memref<5x32x32xbf16, #tpu.memory_space<vmem>>, vector<1x32x32xbf16>
    %88 = vector.shape_cast %87 : vector<1x32x32xbf16> to vector<32x32xbf16>
    %cst_68 = arith.constant dense<0.000000e+00> : vector<128x32xf32>
    %89 = tpu.matmul %86, %88, %cst_68 {dimension_numbers = #tpu.dot_dimension_numbers<[1], [0], [0], [1], [0, 0, 1, 1], [], []>} : vector<128x32xbf16>, vector<32x32xbf16>, vector<128x32xf32> -> vector<128x32xf32>
    %c3_69 = arith.constant 3 : index
    %c0_70 = arith.constant 0 : index
    %90 = vector.load %arg6[%c3_69, %c0_70] : memref<5x32xf32, #tpu.memory_space<vmem>>, vector<1x32xf32>
    %91 = vector.broadcast %90 : vector<1x32xf32> to vector<128x32xf32>
    %92 = arith.addf %89, %91 : vector<128x32xf32>
    %cst_71 = arith.constant 0.000000e+00 : f32
    %93 = vector.broadcast %cst_71 : f32 to vector<128x32xf32>
    %94 = arith.maximumf %92, %93 : vector<128x32xf32>
    %95 = arith.truncf %94 : vector<128x32xf32> to vector<128x32xbf16>
    %c3_72 = arith.constant 3 : index
    %c0_73 = arith.constant 0 : index
    %c0_74 = arith.constant 0 : index
    %96 = vector.load %arg8[%c3_72, %c0_73, %c0_74] : memref<5x32x32xbf16, #tpu.memory_space<vmem>>, vector<1x32x32xbf16>
    %97 = vector.shape_cast %96 : vector<1x32x32xbf16> to vector<32x32xbf16>
    %cst_75 = arith.constant dense<0.000000e+00> : vector<128x32xf32>
    %98 = tpu.matmul %95, %97, %cst_75 {dimension_numbers = #tpu.dot_dimension_numbers<[1], [0], [0], [1], [0, 0, 1, 1], [], []>} : vector<128x32xbf16>, vector<32x32xbf16>, vector<128x32xf32> -> vector<128x32xf32>
    %99 = arith.addf %75, %98 : vector<128x32xf32>
    %cst_76 = arith.constant dense<0.000000e+00> : vector<128x32xf32>
    %100 = tpu.matmul %0, %95, %cst_76 {dimension_numbers = #tpu.dot_dimension_numbers<[1], [0], [0], [1], [0, 0, 1, 1], [], []>} : vector<128x128xbf16>, vector<128x32xbf16>, vector<128x32xf32> -> vector<128x32xf32>
    %101 = arith.truncf %100 : vector<128x32xf32> to vector<128x32xbf16>
    %c4 = arith.constant 4 : index
    %c0_77 = arith.constant 0 : index
    %c0_78 = arith.constant 0 : index
    %102 = vector.load %arg3[%c4, %c0_77, %c0_78] : memref<5x32x32xbf16, #tpu.memory_space<vmem>>, vector<1x32x32xbf16>
    %103 = vector.shape_cast %102 : vector<1x32x32xbf16> to vector<32x32xbf16>
    %cst_79 = arith.constant dense<0.000000e+00> : vector<128x32xf32>
    %104 = tpu.matmul %101, %103, %cst_79 {dimension_numbers = #tpu.dot_dimension_numbers<[1], [0], [0], [1], [0, 0, 1, 1], [], []>} : vector<128x32xbf16>, vector<32x32xbf16>, vector<128x32xf32> -> vector<128x32xf32>
    %c4_80 = arith.constant 4 : index
    %c0_81 = arith.constant 0 : index
    %105 = vector.load %arg4[%c4_80, %c0_81] : memref<5x32xf32, #tpu.memory_space<vmem>>, vector<1x32xf32>
    %106 = vector.broadcast %105 : vector<1x32xf32> to vector<128x32xf32>
    %107 = arith.addf %104, %106 : vector<128x32xf32>
    %cst_82 = arith.constant 0.000000e+00 : f32
    %108 = vector.broadcast %cst_82 : f32 to vector<128x32xf32>
    %109 = arith.maximumf %107, %108 : vector<128x32xf32>
    %110 = arith.truncf %109 : vector<128x32xf32> to vector<128x32xbf16>
    %c4_83 = arith.constant 4 : index
    %c0_84 = arith.constant 0 : index
    %c0_85 = arith.constant 0 : index
    %111 = vector.load %arg5[%c4_83, %c0_84, %c0_85] : memref<5x32x32xbf16, #tpu.memory_space<vmem>>, vector<1x32x32xbf16>
    %112 = vector.shape_cast %111 : vector<1x32x32xbf16> to vector<32x32xbf16>
    %cst_86 = arith.constant dense<0.000000e+00> : vector<128x32xf32>
    %113 = tpu.matmul %110, %112, %cst_86 {dimension_numbers = #tpu.dot_dimension_numbers<[1], [0], [0], [1], [0, 0, 1, 1], [], []>} : vector<128x32xbf16>, vector<32x32xbf16>, vector<128x32xf32> -> vector<128x32xf32>
    %c4_87 = arith.constant 4 : index
    %c0_88 = arith.constant 0 : index
    %114 = vector.load %arg6[%c4_87, %c0_88] : memref<5x32xf32, #tpu.memory_space<vmem>>, vector<1x32xf32>
    %115 = vector.broadcast %114 : vector<1x32xf32> to vector<128x32xf32>
    %116 = arith.addf %113, %115 : vector<128x32xf32>
    %cst_89 = arith.constant 0.000000e+00 : f32
    %117 = vector.broadcast %cst_89 : f32 to vector<128x32xf32>
    %118 = arith.maximumf %116, %117 : vector<128x32xf32>
    %119 = arith.truncf %118 : vector<128x32xf32> to vector<128x32xbf16>
    %c4_90 = arith.constant 4 : index
    %c0_91 = arith.constant 0 : index
    %c0_92 = arith.constant 0 : index
    %120 = vector.load %arg8[%c4_90, %c0_91, %c0_92] : memref<5x32x32xbf16, #tpu.memory_space<vmem>>, vector<1x32x32xbf16>
    %121 = vector.shape_cast %120 : vector<1x32x32xbf16> to vector<32x32xbf16>
    %cst_93 = arith.constant dense<0.000000e+00> : vector<128x32xf32>
    %122 = tpu.matmul %119, %121, %cst_93 {dimension_numbers = #tpu.dot_dimension_numbers<[1], [0], [0], [1], [0, 0, 1, 1], [], []>} : vector<128x32xbf16>, vector<32x32xbf16>, vector<128x32xf32> -> vector<128x32xf32>
    %123 = arith.addf %99, %122 : vector<128x32xf32>
    %c0_94 = arith.constant 0 : index
    %c0_95 = arith.constant 0 : index
    %124 = vector.load %arg7[%c0_94, %c0_95] : memref<8x128xf32, #tpu.memory_space<vmem>>, vector<8x128xf32>
    %125 = arith.truncf %124 : vector<8x128xf32> to vector<8x128xbf16>
    %126 = arith.truncf %123 : vector<128x32xf32> to vector<128x32xbf16>
    %cst_96 = arith.constant dense<0.000000e+00> : vector<8x32xf32>
    %127 = tpu.matmul %125, %126, %cst_96 {dimension_numbers = #tpu.dot_dimension_numbers<[1], [0], [0], [1], [0, 0, 1, 1], [], []>} : vector<8x128xbf16>, vector<128x32xbf16>, vector<8x32xf32> -> vector<8x32xf32>
    %c0_97 = arith.constant 0 : index
    %c0_98 = arith.constant 0 : index
    %128 = vector.load %arg9[%c0_97, %c0_98] : memref<1x32xf32, #tpu.memory_space<vmem>>, vector<1x32xf32>
    %129 = vector.broadcast %128 : vector<1x32xf32> to vector<8x32xf32>
    %130 = arith.addf %127, %129 : vector<8x32xf32>
    %cst_99 = arith.constant 0.000000e+00 : f32
    %131 = vector.broadcast %cst_99 : f32 to vector<8x32xf32>
    %132 = arith.maximumf %130, %131 : vector<8x32xf32>
    %133 = arith.truncf %132 : vector<8x32xf32> to vector<8x32xbf16>
    %c0_100 = arith.constant 0 : index
    %c0_101 = arith.constant 0 : index
    %134 = vector.load %arg10[%c0_100, %c0_101] : memref<32x128xbf16, #tpu.memory_space<vmem>>, vector<32x128xbf16>
    %cst_102 = arith.constant dense<0.000000e+00> : vector<8x128xf32>
    %135 = tpu.matmul %133, %134, %cst_102 {dimension_numbers = #tpu.dot_dimension_numbers<[1], [0], [0], [1], [0, 0, 1, 1], [], []>} : vector<8x32xbf16>, vector<32x128xbf16>, vector<8x128xf32> -> vector<8x128xf32>
    %c0_103 = arith.constant 0 : index
    %c0_104 = arith.constant 0 : index
    %136 = vector.load %arg11[%c0_103, %c0_104] : memref<1x128xf32, #tpu.memory_space<vmem>>, vector<1x128xf32>
    %137 = vector.broadcast %136 : vector<1x128xf32> to vector<8x128xf32>
    %138 = arith.addf %135, %137 : vector<8x128xf32>
    %cst_105 = arith.constant dense<0xFF800000> : vector<8xf32>
    %139 = vector.multi_reduction <maximumf>, %138, %cst_105 [1] : vector<8x128xf32> to vector<8xf32>
    %140 = vector.shape_cast %139 : vector<8xf32> to vector<8x1xf32>
    %141 = vector.broadcast %140 : vector<8x1xf32> to vector<8x128xf32>
    %142 = arith.subf %138, %141 : vector<8x128xf32>
    %143 = math.exp %142 : vector<8x128xf32>
    %cst_106 = arith.constant dense<0.000000e+00> : vector<8xf32>
    %144 = vector.multi_reduction <add>, %143, %cst_106 [1] : vector<8x128xf32> to vector<8xf32>
    %145 = vector.shape_cast %144 : vector<8xf32> to vector<8x1xf32>
    %146 = vector.broadcast %140 : vector<8x1xf32> to vector<8x128xf32>
    %147 = arith.subf %138, %146 : vector<8x128xf32>
    %148 = math.log %145 : vector<8x1xf32>
    %149 = vector.broadcast %148 : vector<8x1xf32> to vector<8x128xf32>
    %150 = arith.subf %147, %149 : vector<8x128xf32>
    %c0_107 = arith.constant 0 : index
    %c0_108 = arith.constant 0 : index
    %151 = vector.load %arg12[%c0_107, %c0_108] : memref<8x128xf32, #tpu.memory_space<vmem>>, vector<8x128xf32>
    tpu.vector_store %arg12[%c0_107, %c0_108], %150 {strides = array<i32>} : memref<8x128xf32, #tpu.memory_space<vmem>>, vector<8x128xf32>,
    return
  }
  func.func @transform_0(%arg0: i32) -> (i32, i32) {
    %c0_i32 = arith.constant 0 : i32
    return %arg0, %arg0 : i32, i32
  }
  func.func @transform_1(%arg0: i32) -> (i32, i32) {
    %c0_i32 = arith.constant 0 : i32
    %c0_i32_0 = arith.constant 0 : i32
    return %arg0, %c0_i32 : i32, i32
  }
  func.func @transform_2(%arg0: i32) -> (i32, i32, i32) {
    %c0_i32 = arith.constant 0 : i32
    %c0_i32_0 = arith.constant 0 : i32
    %c0_i32_1 = arith.constant 0 : i32
    %c0_i32_2 = arith.constant 0 : i32
    return %c0_i32, %c0_i32_0, %c0_i32_1 : i32, i32, i32
  }
  func.func @transform_3(%arg0: i32) -> (i32, i32) {
    %c0_i32 = arith.constant 0 : i32
    %c0_i32_0 = arith.constant 0 : i32
    %c0_i32_1 = arith.constant 0 : i32
    return %c0_i32, %c0_i32_0 : i32, i32
  }
  func.func @transform_4(%arg0: i32) -> (i32, i32, i32) {
    %c0_i32 = arith.constant 0 : i32
    %c0_i32_0 = arith.constant 0 : i32
    %c0_i32_1 = arith.constant 0 : i32
    %c0_i32_2 = arith.constant 0 : i32
    return %c0_i32, %c0_i32_0, %c0_i32_1 : i32, i32, i32
  }
  func.func @transform_5(%arg0: i32) -> (i32, i32) {
    %c0_i32 = arith.constant 0 : i32
    %c0_i32_0 = arith.constant 0 : i32
    %c0_i32_1 = arith.constant 0 : i32
    return %c0_i32, %c0_i32_0 : i32, i32
  }
  func.func @transform_6(%arg0: i32) -> (i32, i32) {
    %c0_i32 = arith.constant 0 : i32
    return %arg0, %arg0 : i32, i32
  }
  func.func @transform_7(%arg0: i32) -> (i32, i32, i32) {
    %c0_i32 = arith.constant 0 : i32
    %c0_i32_0 = arith.constant 0 : i32
    %c0_i32_1 = arith.constant 0 : i32
    %c0_i32_2 = arith.constant 0 : i32
    return %c0_i32, %c0_i32_0, %c0_i32_1 : i32, i32, i32
  }
  func.func @transform_8(%arg0: i32) -> (i32, i32) {
    %c0_i32 = arith.constant 0 : i32
    %c0_i32_0 = arith.constant 0 : i32
    %c0_i32_1 = arith.constant 0 : i32
    return %c0_i32, %c0_i32_0 : i32, i32
  }
  func.func @transform_9(%arg0: i32) -> (i32, i32) {
    %c0_i32 = arith.constant 0 : i32
    %c0_i32_0 = arith.constant 0 : i32
    %c0_i32_1 = arith.constant 0 : i32
    return %c0_i32, %c0_i32_0 : i32, i32
  }
  func.func @transform_10(%arg0: i32) -> (i32, i32) {
    %c0_i32 = arith.constant 0 : i32
    %c0_i32_0 = arith.constant 0 : i32
    %c0_i32_1 = arith.constant 0 : i32
    return %c0_i32, %c0_i32_0 : i32, i32
  }
  func.func @transform_11(%arg0: i32) -> (i32, i32) {
    %c0_i32 = arith.constant 0 : i32
    %c0_i32_0 = arith.constant 0 : i32
    return %arg0, %c0_i32 : i32, i32
  }
}

</mosaic_0001>

<bundles_post_ra>
// kernel: tpu_custom_call.1
= control target key start
LH: loop header
LB: loop body
LE: loop exit
PB: predicated region body
PF: predicated region fallthrough
CT: control target
= control target key end

     0   :  { %s6110_s0 = inlined_call_operand.vmem [shape: bf16[256,256], index: 0, kind: input, shape index: {}]   ;;  %s6111_s1 = inlined_call_operand.vmem [shape: f32[256,32], index: 1, kind: input, shape index: {}]   ;;  %s6112_s2 = inlined_call_operand.hbm [shape: bf16[5,32,32], index: 2, kind: input, shape index: {}]   ;;  %s6113_s3 = inlined_call_operand.hbm [shape: f32[5,32], index: 3, kind: input, shape index: {}]   ;;  %s6114_s4 = inlined_call_operand.hbm [shape: bf16[5,32,32], index: 4, kind: input, shape index: {}]   ;;  %s6115_s5 = inlined_call_operand.hbm [shape: f32[5,32], index: 5, kind: input, shape index: {}]   ;;  %s6116_s6 = inlined_call_operand.hbm [shape: f32[16,256], index: 6, kind: input, shape index: {}]   ;;  %s6117_s7 = inlined_call_operand.vmem [shape: bf16[5,32,32], index: 7, kind: input, shape index: {}]   ;;  %s6118_s8 = inlined_call_operand.vmem [shape: f32[1,32], index: 8, kind: input, shape index: {}]   ;;  %s6119_s9 = inlined_call_operand.vmem [shape: bf16[32,128], index: 9, kind: input, shape index: {}]   ;;  %s6120_s10 = inlined_call_operand.vmem [shape: f32[1,128], index: 10, kind: input, shape index: {}]   ;;  %s6121_s11 = inlined_call_operand.hbm [shape: f32[16,128], index: 11, kind: output, shape index: {}]  }
   0x1   :  { %6136 = sst [smem:[#allocation26_spill]] %s6112_s2 }
   0x2   :  { %6137 = sst [smem:[#allocation27_spill]] %s6113_s3 }
   0x3   :  { %6138 = sst [smem:[#allocation28_spill]] %s6120_s10 }
   0x4   :  { %6139 = sst [smem:[#allocation29_spill]] %s6121_s11 }
   0x5   :  { %16 = vsyncpa [#allocation4], 0 }
   0x6   :  { %17 = vsyncpa [#allocation7], 0 }
   0x7   :  { %18 = vsyncpa [#allocation10], 0 }
   0x8   :  { %19 = vsyncpa [#allocation5], 0 }
   0x9   :  { %21 = vsyncpa [#allocation5 + $0x1], 0  ;;  %s5411_s17 = smov 0   ;;  %s5413_s18 = smov 0  }
   0xa   :  { %s5415_s19 = smov 0   ;;  %s5417_s20 = smov 0  }
   0xb   :  { %s5419_s21 = smov 0   ;;  %s5421_s22 = smov 0  }
   0xc   :  { %s5423_s23 = smov 0  }
   0xd LB: > { %6140 = sst [smem:[#allocation18_spill]] %s5315_s17  ;;  %s5445_s24 = sadd.s32 4294967295, %s5339_s23   ;;  %s5339_s23 = sphi %s5423_s23, %s6175_s23   ;;  %s5335_s22 = sphi %s5421_s22, %s6182_s22   ;;  %s5331_s21 = sphi %s5419_s21, %s6181_s21   ;;  %s5327_s20 = sphi %s5417_s20, %s6180_s20   ;;  %s5323_s19 = sphi %s5415_s19, %s6178_s19   ;;  %s5319_s18 = sphi %s5413_s18, %s6177_s18   ;;  %s5315_s17 = sphi %s5411_s17, %s6176_s17  }
   0xe   : > { %6141 = sst [smem:[#allocation19_spill]] %s5319_s18  ;;  %s3919_s25 = sadd.s32 4294967294, %s5339_s23  }
   0xf   : > { %6142 = sst [smem:[#allocation20_spill]] %s5323_s19  ;;  %s5449_s26 = sadd.s32 1, %s5339_s23  }
  0x10   : > { %6143 = sst [smem:[#allocation21_spill]] %s5449_s26  ;;  %s36_s27 = sadd.s32 1, %s5335_s22 }
  0x11   : > { %s31_s28 = ssub.s32 %s5339_s23, %s5449_s26  ;;  %p43_p0 = scmp.ne.s32.totalorder %s5335_s22, %s5331_s21 }
  0x12   : > { %s33_s29 = sor.u32 %s31_s28, %s31_s28  ;;  %p44_p1 = scmp.eq.s32.totalorder %s5339_s23, 0 }
  0x13   : > { %p34_p2 = scmp.eq.s32.totalorder %s33_s29, 0  ;;  %p187_p3 = scmp.ne.s32.totalorder %s5331_s21, %s5327_s20 }
  0x14   : > { %p5458_p4 = por %p44_p1, %p43_p0  ;;  %p6130_p5 = scmp.eq.s32.totalorder %s5445_s24, 0 }
  0x15   : > { %s5464_s12 = scalar_select %p34_p2, %s5335_s22, %s36_s27  }
  0x16   : > { %s6144_s30 = scalar_select %p5458_p4, 1, 0 }
  0x17   : > { %6145 = sst [smem:[#allocation22_spill]] %s5464_s12  ;;  %p5468_p6 = por %p6130_p5, %p187_p3 }
  0x18   : > { %p282_p7 = scmp.eq.s32.totalorder %s31_s28, 0  ;;  %s284_s14 = sadd.s32 1, %s5323_s19 }
  0x19   : > { %s6146_s13 = scalar_select %p5468_p6, 1, 0 }
  0x1a   : > { %p294_p8 = scmp.ne.s32.totalorder %s5323_s19, %s5319_s18  ;;  %p295_p9 = scmp.eq.s32.totalorder %s5445_s24, 1 }
  0x1b   : > { %s5476_s15 = scalar_select %p282_p7, %s5323_s19, %s284_s14  }
  0x1c   : > { %p300_p10 = scmp.ne.s32.totalorder %s5319_s18, %s5315_s17  ;;  %p301_p11 = scmp.eq.s32.totalorder %s3919_s25, 1 }
  0x1d   : > { %6147 = sst [smem:[#allocation23_spill]] %s5476_s15  ;;  %p3920_p12 = scmp.ge.s32.totalorder %s5339_s23, 1 }
  0x1e   : > { %p5482_p13 = por %p295_p9, %p294_p8  ;;  %p308_p0 = scmp.lt.s32.totalorder %s5339_s23, 3 }
  0x1f   : > { %p5487_p1 = por %p301_p11, %p300_p10  ;;  %s5341_s28 = smov [#allocation6]  }
  0x20   : > { %s6148_s16 = scalar_select %p5482_p13, 1, 0 }
  0x21   : > { %s6150_s20 = scalar_select %p5487_p1, 1, 0 }
  0x22   : > { %6149 = sst [smem:[#allocation24_spill]] %s6148_s16  ;;  %p5491_p2 = pnand %p3920_p12, %p308_p0 }
  0x23   : > { %6151 = sst [smem:[#allocation25_spill]] %s6150_s20  ;;  %s334_s29 = sshll.u32 %s5341_s28, 4  ;;  %s335_s29 = int_to_ptr.vmem [resolvable:$true] %s334_s29 }
  0x24   : > { %s6152_s27 = scalar_select %p5491_p2, 1, 0 }
  0x25   : > { %p4955_p3 = pneg %p5491_p2  ;;  %s5342_s25 = smov [#allocation3]  }
  0x26   : > { %s320_s14 = sshll.u32 %s5342_s25, 4  ;;  %s5343_s15 = smov [#allocation8]   ;;  %s5503_s14 = int_to_ptr.vmem [resolvable:$true] %s320_s14 }
  0x27   : > { %p5499_p7 = pnand %p4955_p3, %p6130_p5  ;;  %s5505_s19 = sshll.u32 %s5343_s15, 4  ;;  %s345_s19 = int_to_ptr.vmem [resolvable:$true] %s5505_s19 }
  0x28   : > { %s6154_s3 = sld [smem:[#allocation27_spill]] }
  0x29   : > { %p5515_p9 = pneg %p5499_p7 }
  0x2e   : > { %s5097_s28 = scalar_lea.hbm %s6154_s3, 128 }
  0x2f   : > { %p5098_p8 = scmp.ne.s32.totalorder %s6154_s3, %s5097_s28  ;;  %p5104_p12 = scmp.lt.u32.totalorder %s5097_s28, %s6154_s3 }
  0x31   : > { %p5100_p10 = pnand %p5515_p9, %p5098_p8 }
  0x33   : > { %p5101_p11 = pneg %p5100_p10 }
  0x35   : > { %p5106_p0 = pnand %p5104_p12, %p5101_p11 }
  0x37   : > { %5109 = shalt.err (!%p5106_p0)
}
  0x38   : > { %s5110_s26 = scalar_lea.vmem %s335_s29, 128  ;;  %p5118_p13 = scmp.lt.s32.totalorder %s335_s29, %s335_s29 }
  0x39   : > { %p5111_p3 = scmp.ne.s32.totalorder %s335_s29, %s5110_s26  ;;  %p5119_p6 = scmp.lt.s32.totalorder %s5110_s26, %s5110_s26 }
  0x3b   : > { %p5113_p5 = pnand %p5111_p3, %p5515_p9  ;;  %p5120_p2 = por %p5119_p6, %p5118_p13 }
  0x3d   : > { %p5114_p1 = pneg %p5113_p5 }
  0x3f   : > { %p5121_p4 = pnand %p5120_p2, %p5114_p1 }
  0x41   : > { %5124 = shalt.err (!%p5121_p4)
}
  0x42   : > { %4961 = dma.hbm_to_vmem [thread:$0]  (!%p5499_p7), %s6154_s3, 128, %s335_s29, [#allocation7]  }
  0x43   : > { %s6156_s2 = sld [smem:[#allocation26_spill]] }
  0x49   : > { %s5125_s28 = scalar_lea.hbm %s6156_s2, 1280 }
  0x4a   : > { %p5126_p5 = scmp.ne.s32.totalorder %s6156_s2, %s5125_s28  ;;  %p5132_p4 = scmp.lt.u32.totalorder %s5125_s28, %s6156_s2 }
  0x4c   : > { %p5128_p8 = pnand %p5126_p5, %p5515_p9 }
  0x4e   : > { %p5129_p6 = pneg %p5128_p8 }
  0x50   : > { %p5134_p13 = pnand %p5132_p4, %p5129_p6 }
  0x52   : > { %5137 = shalt.err (!%p5134_p13)
}
  0x53   : > { %s5138_s29 = scalar_lea.vmem %s5503_s14, 1280  ;;  %p5146_p11 = scmp.lt.s32.totalorder %s5503_s14, %s5503_s14 }
  0x54   : > { %p5139_p1 = scmp.ne.s32.totalorder %s5503_s14, %s5138_s29  ;;  %p5147_p12 = scmp.lt.s32.totalorder %s5138_s29, %s5138_s29 }
  0x56   : > { %p5141_p2 = pnand %p5139_p1, %p5515_p9  ;;  %p5148_p0 = por %p5147_p12, %p5146_p11 }
  0x58   : > { %p5142_p10 = pneg %p5141_p2 }
  0x5a   : > { %p5149_p3 = pnand %p5148_p0, %p5142_p10 }
  0x5c   : > { %5152 = shalt.err (!%p5149_p3)
}
  0x5d   : > { %s5344_s18 = smov 64   ;;  %s5345_s10 = smov 4  }
  0x5e   : > { %4958 = dma.hbm_to_vmem [thread:$0]  (!%p5499_p7), %s6156_s2, 1280, %s5503_s14, [#allocation4], %s5344_s18, %s5344_s18, %s5345_s10  }
  0x5f   : > { %s5153_s28 = scalar_lea.hbm %s6114_s4, 1280 }
  0x60   : > { %p5154_p5 = scmp.ne.s32.totalorder %s6114_s4, %s5153_s28  ;;  %p5160_p4 = scmp.lt.u32.totalorder %s5153_s28, %s6114_s4 }
  0x62   : > { %p5156_p8 = pnand %p5154_p5, %p5515_p9 }
  0x64   : > { %p5157_p6 = pneg %p5156_p8 }
  0x66   : > { %p5162_p13 = pnand %p5160_p4, %p5157_p6 }
  0x68   : > { %5165 = shalt.err (!%p5162_p13)
}
  0x69   : > { %s5166_s11 = scalar_lea.vmem %s345_s19, 1280  ;;  %p5174_p11 = scmp.lt.s32.totalorder %s345_s19, %s345_s19 }
  0x6a   : > { %p5167_p1 = scmp.ne.s32.totalorder %s345_s19, %s5166_s11  ;;  %p5175_p12 = scmp.lt.s32.totalorder %s5166_s11, %s5166_s11 }
  0x6c   : > { %p5169_p2 = pnand %p5167_p1, %p5515_p9  ;;  %p5176_p0 = por %p5175_p12, %p5174_p11 }
  0x6e   : > { %p5170_p10 = pneg %p5169_p2 }
  0x70   : > { %p5177_p3 = pnand %p5176_p0, %p5170_p10 }
  0x72   : > { %5180 = shalt.err (!%p5177_p3)
}
  0x73   : > { %4964 = dma.hbm_to_vmem [thread:$0]  (!%p5499_p7), %s6114_s4, 1280, %s345_s19, [#allocation7], %s5344_s18, %s5344_s18, %s5345_s10  }
  0x74   : > { %s5346_s3 = smov [#allocation9]   ;;  %s5181_s15 = scalar_lea.hbm %s6115_s5, 128 }
  0x75   : > { %s358_s16 = sshll.u32 %s5346_s3, 4  ;;  %p5182_p5 = scmp.ne.s32.totalorder %s6115_s5, %s5181_s15  ;;  %s359_s16 = int_to_ptr.vmem [resolvable:$true] %s358_s16 }
  0x76   : > { %p5188_p4 = scmp.lt.u32.totalorder %s5181_s15, %s6115_s5 }
  0x77   : > { %p5184_p8 = pnand %p5182_p5, %p5515_p9 }
  0x79   : > { %p5185_p6 = pneg %p5184_p8 }
  0x7b   : > { %p5190_p13 = pnand %p5188_p4, %p5185_p6 }
  0x7d   : > { %5193 = shalt.err (!%p5190_p13)
}
  0x7e   : > { %s5194_s19 = scalar_lea.vmem %s359_s16, 128  ;;  %p5202_p11 = scmp.lt.s32.totalorder %s359_s16, %s359_s16 }
  0x7f   : > { %p5195_p1 = scmp.ne.s32.totalorder %s359_s16, %s5194_s19  ;;  %p5203_p12 = scmp.lt.s32.totalorder %s5194_s19, %s5194_s19 }
  0x81   : > { %p5197_p2 = pnand %p5195_p1, %p5515_p9  ;;  %p5204_p0 = por %p5203_p12, %p5202_p11 }
  0x83   : > { %p5198_p10 = pneg %p5197_p2 }
  0x85   : > { %p5205_p3 = pnand %p5204_p0, %p5198_p10 }
  0x87   : > { %5208 = shalt.err (!%p5205_p3)
}
  0x88   : > { %4967 = dma.hbm_to_vmem [thread:$0]  (!%p5499_p7), %s6115_s5, 128, %s359_s16, [#allocation10]  }
  0x89   : > { %p3925_p5 = scmp.ge.s32.totalorder %s5339_s23, 2 }
  0x8a   : > { %p6157_p8 = scmp.ne.s32.totalorder (!%p3925_p5), %s6144_s30, 0 }
  0x8b   : > { %377 = sbr.rel (%p3925_p5) target bundleno = 189 (0xbd), region = 48 }
  0x92   : > { %380 = sbr.rel (!%p6157_p8) target bundleno = 162 (0xa2), region = 52  ;;  %s382_s2 = sand.u32 (%p6157_p8), 1, %s5335_s22  }
  0x93   : > { %s4136_s25 = sshll.u32 (%p6157_p8), %s5339_s23, 5  ;;  %s3926_s14 = sshll.u32 (%p6157_p8), %s382_s2, 6 }
  0x94   : > { %s387_s17 = sadd.s32 (%p6157_p8), %s5339_s23, %s4136_s25  ;;  %s384_s28 = scalar_lea.vmem (%p6157_p8), [#allocation2], %s3926_s14 }
  0x95   : > { %s3929_s12 = sshll.u32 (%p6157_p8), %s387_s17, 2 }
  0x96   : > { %s5602_s16 = scalar_lea.vmem (%p6157_p8), %s6110_s0, %s3929_s12 }
  0x97   : > { %v405_v0 = vld [vmem:[%s5602_s16] sm:$0xf] (%p6157_p8)  ;;  %v407_v1 = vld [vmem:[%s5602_s16 + $0x8] sm:$0xf] (%p6157_p8)  ;;  %v409_v2 = vld [vmem:[%s5602_s16 + $0x10] sm:$0xf] (%p6157_p8) }
  0x98   : > { %406 = vst [vmem:[%s384_s28] sm:$0xf] (%p6157_p8), %v405_v0  ;;  %408 = vst [vmem:[%s384_s28 + $0x4] sm:$0xf] (%p6157_p8), %v407_v1  ;;  %v411_v3 = vld [vmem:[%s5602_s16 + $0x18] sm:$0xf] (%p6157_p8) }
  0x99   : > { %410 = vst [vmem:[%s384_s28 + $0x8] sm:$0xf] %v409_v2  ;;  %v413_v4 = vld [vmem:[%s5602_s16 + $0x20] sm:$0xf]  ;;  %v415_v5 = vld [vmem:[%s5602_s16 + $0x28] sm:$0xf] }
  0x9a   : > { %412 = vst [vmem:[%s384_s28 + $0xc] sm:$0xf] %v411_v3  ;;  %414 = vst [vmem:[%s384_s28 + $0x10] sm:$0xf] %v413_v4  ;;  %v417_v6 = vld [vmem:[%s5602_s16 + $0x30] sm:$0xf] }
  0x9b   : > { %416 = vst [vmem:[%s384_s28 + $0x14] sm:$0xf] %v415_v5  ;;  %v419_v7 = vld [vmem:[%s5602_s16 + $0x38] sm:$0xf]  ;;  %v421_v8 = vld [vmem:[%s5602_s16 + $0x40] sm:$0xf] }
  0x9c   : > { %418 = vst [vmem:[%s384_s28 + $0x18] sm:$0xf] %v417_v6  ;;  %420 = vst [vmem:[%s384_s28 + $0x1c] sm:$0xf] %v419_v7  ;;  %v423_v9 = vld [vmem:[%s5602_s16 + $0x48] sm:$0xf] }
  0x9d   : > { %422 = vst [vmem:[%s384_s28 + $0x20] sm:$0xf] %v421_v8  ;;  %v425_v10 = vld [vmem:[%s5602_s16 + $0x50] sm:$0xf]  ;;  %v427_v11 = vld [vmem:[%s5602_s16 + $0x58] sm:$0xf] }
  0x9e   : > { %424 = vst [vmem:[%s384_s28 + $0x24] sm:$0xf] %v423_v9  ;;  %426 = vst [vmem:[%s384_s28 + $0x28] sm:$0xf] %v425_v10  ;;  %v429_v12 = vld [vmem:[%s5602_s16 + $0x60] sm:$0xf] }
  0x9f   : > { %428 = vst [vmem:[%s384_s28 + $0x2c] sm:$0xf] %v427_v11  ;;  %v431_v13 = vld [vmem:[%s5602_s16 + $0x68] sm:$0xf]  ;;  %v433_v14 = vld [vmem:[%s5602_s16 + $0x70] sm:$0xf] }
  0xa0   : > { %430 = vst [vmem:[%s384_s28 + $0x30] sm:$0xf] %v429_v12  ;;  %432 = vst [vmem:[%s384_s28 + $0x34] sm:$0xf] %v431_v13  ;;  %v435_v15 = vld [vmem:[%s5602_s16 + $0x78] sm:$0xf] }
  0xa1   : > { %434 = vst [vmem:[%s384_s28 + $0x38] sm:$0xf] %v433_v14  ;;  %436 = vst [vmem:[%s384_s28 + $0x3c] sm:$0xf] %v435_v15 }
  0xa2 PF: > { %s501_s15 = sand.u32 1, %s5339_s23   ;;  %s503_s26 = sand.u32 1, %s5335_s22  }
  0xa3   : > { %s3930_s29 = sshll.u32 %s503_s26, 3  ;;  %s3931_s11 = sshll.u32 %s5339_s23, 1 }
  0xa4   : > { %s510_s19 = sadd.s32 %s5339_s23, %s3931_s11  ;;  %s505_s18 = scalar_lea.vmem [#allocation11], %s3930_s29 }
  0xa5   : > { %s514_s10 = sshll.u32 %s505_s18, 4  ;;  %s3932_s2 = sshll.u32 %s510_s19, 7  ;;  %s5624_s10 = int_to_ptr.vmem [resolvable:$true] %s514_s10 }
  0xa6   : > { %s512_s17 = scalar_lea.hbm %s6116_s6, %s3932_s2  ;;  %s502_s12 = scalar_lea.sflag [#allocation4], %s501_s15 }
  0xa7   : > { %s5209_s3 = scalar_lea.hbm %s512_s17, 128  ;;  %p6158_p9 = scmp.ne.s32.totalorder %s6144_s30, 0 }
  0xa8   : > { %p5210_p7 = scmp.ne.s32.totalorder %s512_s17, %s5209_s3  ;;  %s5213_s28 = scalar_lea.hbm %s6116_s6, 512 }
  0xa9   : > { %p5214_p13 = scmp.lt.u32.totalorder %s512_s17, %s6116_s6  ;;  %p5215_p1 = scmp.lt.u32.totalorder %s5213_s28, %s5209_s3 }
  0xaa   : > { %p5211_p6 = pnand %p5210_p7, %p6158_p9  ;;  %p5217_p10 = scmp.lt.u32.totalorder %s5209_s3, %s512_s17 }
  0xab   : > { %p5216_p2 = por %p5215_p1, %p5214_p13 }
  0xac   : > { %p5212_p4 = pneg %p5211_p6 }
  0xad   : > { %p5218_p11 = por %p5217_p10, %p5216_p2 }
  0xaf   : > { %p5219_p12 = pnand %p5218_p11, %p5212_p4 }
  0xb1   : > { %5222 = shalt.err (!%p5219_p12)
}
  0xb2   : > { %s5223_s15 = scalar_lea.vmem %s5624_s10, 128  ;;  %s5347_s11 = smov [#allocation11]  }
  0xb3   : > { %p5224_p0 = scmp.ne.s32.totalorder %s5624_s10, %s5223_s15  ;;  %s5227_s19 = sshll.u32 %s5347_s11, 4  ;;  %s5228_s19 = int_to_ptr.vmem [resolvable:$false] %s5227_s19 }
  0xb4   : > { %s5229_s18 = scalar_lea.vmem %s5228_s19, 256  ;;  %p5230_p7 = scmp.lt.s32.totalorder %s5624_s10, %s5228_s19 }
  0xb5   : > { %p5225_p3 = pnand %p5224_p0, %p6158_p9  ;;  %p5231_p6 = scmp.lt.s32.totalorder %s5229_s18, %s5223_s15 }
  0xb7   : > { %p5226_p8 = pneg %p5225_p3  ;;  %p5232_p13 = por %p5231_p6, %p5230_p7 }
  0xb9   : > { %p5233_p1 = pnand %p5232_p13, %p5226_p8 }
  0xbb   : > { %5236 = shalt.err (!%p5233_p1)
}
  0xbc   : > { %4943 = dma.hbm_to_vmem [thread:$0]  (%p6158_p9), %s512_s17, 128, %s5624_s10, %s502_s12  }
  0xbd PF: > { %p6159_p4 = scmp.ne.s32.totalorder %s6152_s27, 0 }
  0xbe   : > { %s526_s2 = sand.u32 (!%p6159_p4), 1, %s5331_s21   ;;  %p6160_p2 = scmp.eq.s32.totalorder (!%p6159_p4), %s5445_s24, 0 }
  0xbf   : > { %523 = sbr.rel (%p6159_p4) target bundleno = 4693 (0x1255), region = 101  ;;  %s3934_s25 = sshll.u32 (!%p6159_p4), %s526_s2, 6 }
  0xc0   : > { %s5648_s14 = scalar_lea.vmem (!%p6159_p4), [#allocation2], %s3934_s25 }
  0xc6   : > { %5294 = dma.done.wait (%p6160_p2), [#allocation4], 1280   ;;  %p6161_p10 = pmov %p6160_p2 }
  0xc7   : > { %p6162_p11 = pmov %p6160_p2 }
  0xc8   : > { %5296 = vsyncadd (%p6161_p10), [#allocation4], 4294966016 }
  0xc9   : > { %5298 = dma.done.wait (%p6162_p11), [#allocation7], 1408   ;;  %p6163_p9 = pmov %p6160_p2 }
  0xca   : > { %p6164_p12 = pmov %p6160_p2 }
  0xcb   : > { %5300 = vsyncadd (%p6163_p9), [#allocation7], 4294965888 }
  0xcc   : > { %5302 = dma.done.wait (%p6164_p12), [#allocation10], 128   ;;  %p6165_p0 = pmov %p6160_p2 }
  0xcd   : > { %s548_s30 = sand.u32 1, %s5445_s24   ;;  %s5663_s27 = sshll.u32 %s526_s2, 3 }
  0xce   : > { %5304 = vsyncadd (%p6165_p0), [#allocation10], 4294967168  ;;  %s549_s10 = scalar_lea.sflag [#allocation4], %s548_s30  ;;  %s552_s17 = scalar_lea.vmem [#allocation11], %s5663_s27 }
  0xcf   : > { %p6166_p3 = scmp.ne.s32.totalorder %s6146_s13, 0 }
  0xd1   : > { %5306 = dma.done.wait (%p6166_p3), %s549_s10, 128  }
  0xd2   : > { %5308 = vsyncadd (%p6166_p3), %s549_s10, 4294967168  ;;  %s3941_s12 = sshll.u32 %s5445_s24, 4  ;;  %v5685_v27 = vld [vmem:[%s5648_s14] sm:$0xff]   ;;  %v5697_v42 = vld [vmem:[%s5648_s14 + $0x8] sm:$0xff]   ;;  %vm822_vm0 = vcmask 261120   ;;  %vm5349_vm1 = vmmov 0  }
  0xd3   : > { %p602_p8 = scmp.lt.s32.totalorder %s3941_s12, 31  ;;  %4395 = vmatprep.mubr.bf16.mxu0 %v5685_v27  ;;  %v5053_v34 = vld [vmem:[#allocation3] sm:$0xff]   ;;  %v5700_v43 = vld [vmem:[%s5648_s14 + $0x10] sm:$0xff]   ;;  %v5705_v44 = vld [vmem:[%s5648_s14 + $0x18] sm:$0xff]   ;;  %s6167_s30 = sld [smem:[#allocation28_spill]] }
  0xd4   : > { %4411 = vmatprep.subr.bf16.mxu1 %v5053_v34  ;;  %v5708_v45 = vld [vmem:[%s5648_s14 + $0x20] sm:$0xff]   ;;  %v5713_v46 = vld [vmem:[%s5648_s14 + $0x28] sm:$0xff]   ;;  %v5716_v47 = vld [vmem:[%s5648_s14 + $0x30] sm:$0xff]   ;;  %s6168_s10 = sld [smem:[#allocation19_spill]]  ;;  %s4133_s20 = sshll.u32 %s5445_s24, 7 }
  0xd5   : > { %s6184_s12 = smov (!%p602_p8, %s3941_s12), 31  ;;  %4412 = vmatpush3.bf16.msra.mxu1 %v5053_v34  ;;  %v5721_v48 = vld [vmem:[%s5648_s14 + $0x38] sm:$0xff]   ;;  %v5054_v49 = vld [vmem:[#allocation3 + $0x8] sm:$0xff]   ;;  %v5056_v57 = vld [vmem:[#allocation8 + $0x8] sm:$0xff]   ;;  %s6170_s29 = sld [smem:[#allocation29_spill]] }
  0xd6   : > { %s3942_s3 = sshll.u32 %s6184_s12, 3  ;;  %4413 = vmatprep.subr.bf16.mxu1 %v5054_v49  ;;  %v5055_v50 = vld [vmem:[#allocation8] sm:$0xff]   ;;  %v3951_v12 = vld [vmem:[#allocation6] ss:$0 sm:$0xff]  ;;  %s6169_s12 = sld [smem:[#allocation24_spill]] }
  0xd7   : > { %s5674_s28 = scalar_lea.vmem %s6111_s1, %s3942_s3  ;;  %s5350_s24 = smov [#allocation12]  }
  0xd8   : > { %v624_v16 = vld [vmem:[%s5674_s28] sm:$0xff]  ;;  %v625_v17 = vld [vmem:[%s5674_s28 + $0x8] sm:$0xff]  ;;  %v626_v18 = vld [vmem:[%s5674_s28 + $0x10] sm:$0xff]  ;;  %s5241_s18 = sshll.u32 %s5350_s24, 4  ;;  %s5242_s18 = int_to_ptr.vmem [resolvable:$false] %s5241_s18 }
  0xd9   : > { %v640_v19 = vpack.c.bf16 %v625_v17, %v624_v16  ;;  %v627_v20 = vld [vmem:[%s5674_s28 + $0x18] sm:$0xff]  ;;  %v628_v22 = vld [vmem:[%s5674_s28 + $0x20] sm:$0xff]  ;;  %v629_v23 = vld [vmem:[%s5674_s28 + $0x28] sm:$0xff]  ;;  %4414 = vmatpush3.bf16.msra.mxu1 %v5054_v49  ;;  %s5243_s27 = scalar_lea.vmem %s5242_s18, 256 }
  0xda   : > { %v641_v21 = vpack.c.bf16 %v627_v20, %v626_v18  ;;  %v630_v24 = vld [vmem:[%s5674_s28 + $0x30] sm:$0xff]  ;;  %v642_v25 = vpack.c.bf16 %v629_v23, %v628_v22  ;;  %v631_v26 = vld [vmem:[%s5674_s28 + $0x38] sm:$0xff]  ;;  %v632_v29 = vld [vmem:[%s5674_s28 + $0x40] sm:$0xff]  ;;  %4431 = vmatprep.subr.bf16.mxu1 %v5055_v50 }
  0xdb   : > { %4379 = vmatprep.subr.bf16.mxu0 %v640_v19  ;;  %v643_v28 = vpack.c.bf16 %v631_v26, %v630_v24  ;;  %v633_v30 = vld [vmem:[%s5674_s28 + $0x48] sm:$0xff]  ;;  %v634_v31 = vld [vmem:[%s5674_s28 + $0x50] sm:$0xff]  ;;  %v635_v33 = vld [vmem:[%s5674_s28 + $0x58] sm:$0xff]  ;;  %s6058_s15 = scalar_lea.hbm %s6170_s29, %s4133_s20 }
  0xdc   : > { %4380 = vmatpush3.bf16.msra.mxu0 %v640_v19  ;;  %v644_v32 = vpack.c.bf16 %v633_v30, %v632_v29  ;;  %v636_v35 = vld [vmem:[%s5674_s28 + $0x60] sm:$0xff]  ;;  %v637_v36 = vld [vmem:[%s5674_s28 + $0x68] sm:$0xff]  ;;  %v645_v37 = vpack.c.bf16 %v635_v33, %v634_v31  ;;  %v638_v38 = vld [vmem:[%s5674_s28 + $0x70] sm:$0xff]  ;;  %p6171_p6 = scmp.ne.s32.totalorder %s6169_s12, 0 }
  0xdd   : > { %4381 = vmatprep.subr.bf16.mxu0 %v641_v21  ;;  %v639_v39 = vld [vmem:[%s5674_s28 + $0x78] sm:$0xff]  ;;  %v646_v40 = vpack.c.bf16 %v637_v36, %v636_v35 }
  0xde   : > { %v647_v41 = vpack.c.bf16 %v639_v39, %v638_v38 }
  0xe0   : > { %4382 = vmatpush3.bf16.msra.mxu0 %v641_v21 }
  0xe1   : > { %4383 = vmatprep.subr.bf16.mxu0 %v642_v25 }
  0xe4   : > { %4384 = vmatpush3.bf16.msra.mxu0 %v642_v25 }
  0xe5   : > { %4385 = vmatprep.subr.bf16.mxu0 %v643_v28 }
  0xe8   : > { %4386 = vmatpush3.bf16.msra.mxu0 %v643_v28 }
  0xe9   : > { %4387 = vmatprep.subr.bf16.mxu0 %v644_v32 }
  0xec   : > { %4388 = vmatpush3.bf16.msra.mxu0 %v644_v32 }
  0xed   : > { %4389 = vmatprep.subr.bf16.mxu0 %v645_v37 }
  0xf0   : > { %4390 = vmatpush3.bf16.msra.mxu0 %v645_v37 }
  0xf1   : > { %4391 = vmatprep.subr.bf16.mxu0 %v646_v40 }
  0xf4   : > { %4392 = vmatpush3.bf16.msra.mxu0 %v646_v40 }
  0xf5   : > { %4393 = vmatprep.subr.bf16.mxu0 %v647_v41 }
  0xf8   : > { %4394 = vmatpush3.bf16.msra.mxu0 %v647_v41 }
  0xfb   : > { %4396 = vmatmul.mubr.bf16.vlgmr.msra.gmra.mrb[0].mxu0 %v5697_v42 }
  0xfc   : > { %4399 = vmatprep.mubr.bf16.mxu0 %v5700_v43 }
 0x103   : > { %4400 = vmatmul.mubr.bf16.gmra.mrb[4].mxu0 %v5705_v44 }
 0x104   : > { %4403 = vmatprep.mubr.bf16.mxu0 %v5708_v45 }
 0x10b   : > { %4404 = vmatmul.mubr.bf16.gmra.mrb[8].mxu0 %v5713_v46 }
 0x10c   : > { %4407 = vmatprep.mubr.bf16.mxu0 %v5716_v47 }
 0x113   : > { %4408 = vmatmul.mubr.bf16.gmra.mrb[12].mxu0 %v5721_v48 }
 0x114   : > { %4467 = vmatprep.mubr.bf16.mxu0 %v5685_v27 }
 0x1ce   : > { %v4397_v51 = vpop.f32.mrb[0].mxu0 }
 0x1cf   : > { %v730_v52 = vpop.f32.mrb[1].mxu0 }
 0x1d0   : > { %v4398_v53 = vpop.f32.mrb[2].mxu0 }
 0x1d1   : > { %v794_v54 = vpack.c.bf16 %v4398_v53, %v4397_v51  ;;  %v733_v55 = vpop.f32.mrb[3].mxu0 }
 0x1d2   : > { %v793_v56 = vpack.c.bf16 %v733_v55, %v730_v52 }
 0x1d4   : > { %4415 = vmatprep.mubr.msk.bf16.mxu1 %vm822_vm0, %v793_v56 }
 0x1d5   : > { %4416 = vmatmul.mubr.msk.bf16.vlgmr.msra.gmra.mrb[0].mxu1 %vm822_vm0, %v794_v54 }
 0x1d6   : > { %v4401_v58 = vpop.f32.mrb[4].mxu0  ;;  %4432 = vmatpush3.bf16.msra.mxu1 %v5055_v50 }
 0x1d7   : > { %v746_v59 = vpop.f32.mrb[5].mxu0  ;;  %4433 = vmatprep.subr.bf16.mxu1 %v5056_v57 }
 0x1d8   : > { %v4402_v60 = vpop.f32.mrb[6].mxu0 }
 0x1d9   : > { %v796_v61 = vpack.c.bf16 %v4402_v60, %v4401_v58  ;;  %v749_v62 = vpop.f32.mrb[7].mxu0 }
 0x1da   : > { %v795_v63 = vpack.c.bf16 %v749_v62, %v746_v59  ;;  %4434 = vmatpush3.bf16.msra.mxu1 %v5056_v57 }
 0x1dc   : > { %4419 = vmatprep.mubr.msk.bf16.mxu1 %vm822_vm0, %v795_v63 }
 0x1dd   : > { %4420 = vmatmul.mubr.msk.bf16.gmra.mrb[4].mxu1 %vm822_vm0, %v796_v61 }
 0x1de   : > { %v4405_v0 = vpop.f32.mrb[8].mxu0 }
 0x1df   : > { %v762_v1 = vpop.f32.mrb[9].mxu0 }
 0x1e0   : > { %v4406_v2 = vpop.f32.mrb[10].mxu0 }
 0x1e1   : > { %v798_v3 = vpack.c.bf16 %v4406_v2, %v4405_v0  ;;  %v765_v4 = vpop.f32.mrb[11].mxu0 }
 0x1e2   : > { %v797_v5 = vpack.c.bf16 %v765_v4, %v762_v1 }
 0x1e4   : > { %4423 = vmatprep.mubr.msk.bf16.mxu1 %vm822_vm0, %v797_v5 }
 0x1e5   : > { %4424 = vmatmul.mubr.msk.bf16.gmra.mrb[8].mxu1 %vm822_vm0, %v798_v3 }
 0x1e6   : > { %v4409_v6 = vpop.f32.mrb[12].mxu0 }
 0x1e7   : > { %v778_v7 = vpop.f32.mrb[13].mxu0 }
 0x1e8   : > { %v4410_v8 = vpop.f32.mrb[14].mxu0 }
 0x1e9   : > { %v800_v9 = vpack.c.bf16 %v4410_v8, %v4409_v6  ;;  %v781_v10 = vpop.f32.mrb[15].mxu0 }
 0x1ea   : > { %v799_v11 = vpack.c.bf16 %v781_v10, %v778_v7 }
 0x1ec   : > { %4427 = vmatprep.mubr.msk.bf16.mxu1 %vm822_vm0, %v799_v11 }
 0x1ed   : > { %4428 = vmatmul.mubr.msk.bf16.gmra.mrb[12].mxu1 %vm822_vm0, %v800_v9 }
 0x2a8   : > { %v4417_v13 = vpop.f32.mrb[0].mxu1 }
 0x2a9   : > { %v890_v14 = vadd.f32 %v4417_v13, %v3951_v12  ;;  %v881_v15 = vpop.f32.mrb[1].mxu1 }
 0x2aa   : > { %v882_v16 = vadd.f32 %v3951_v12, %v881_v15  ;;  %v4418_v17 = vpop.f32.mrb[2].mxu1  ;;  %v5744_v15 = vld [vmem:[#allocation3 + $0x18] sm:$0xff]  }
 0x2ab   : > { %v893_v18 = vadd.f32 %v4418_v17, %v3951_v12  ;;  %v884_v19 = vpop.f32.mrb[3].mxu1  ;;  %v946_v21 = vmax.f32 %v890_v14, 0.0  ;;  %v5741_v14 = vld [vmem:[#allocation3 + $0x10] sm:$0xff]  }
 0x2ac   : > { %v885_v20 = vadd.f32 %v3951_v12, %v884_v19  ;;  %v944_v23 = vmax.f32 %v882_v16, 0.0  ;;  %4867 = vmatprep.subr.bf16.mxu1 %v5741_v14 }
 0x2ad   : > { %v947_v22 = vmax.f32 %v893_v18, 0.0 }
 0x2ae   : > { %v945_v24 = vmax.f32 %v885_v20, 0.0 }
 0x2af   : > { %v961_v25 = vpack.c.bf16 %v947_v22, %v946_v21 }
 0x2b0   : > { %v960_v26 = vpack.c.bf16 %v945_v24, %v944_v23  ;;  %v4421_v28 = vpop.f32.mrb[4].mxu1 }
 0x2b1   : > { %v906_v29 = vadd.f32 %v4421_v28, %v3951_v12  ;;  %v897_v30 = vpop.f32.mrb[5].mxu1 }
 0x2b2   : > { %v898_v31 = vadd.f32 %v3951_v12, %v897_v30  ;;  %v4422_v32 = vpop.f32.mrb[6].mxu1  ;;  %4435 = vmatprep.mubr.msk.bf16.mxu1 %vm822_vm0, %v960_v26 }
 0x2b3   : > { %v909_v33 = vadd.f32 %v4422_v32, %v3951_v12  ;;  %v900_v34 = vpop.f32.mrb[7].mxu1  ;;  %4436 = vmatmul.mubr.msk.bf16.vlgmr.msra.gmra.mrb[16].mxu1 %vm822_vm0, %v961_v25  ;;  %v950_v36 = vmax.f32 %v906_v29, 0.0 }
 0x2b4   : > { %v901_v35 = vadd.f32 %v3951_v12, %v900_v34  ;;  %v948_v38 = vmax.f32 %v898_v31, 0.0  ;;  %4869 = vmatpush3.bf16.msra.mxu1 %v5741_v14 }
 0x2b5   : > { %v951_v37 = vmax.f32 %v909_v33, 0.0  ;;  %4868 = vmatprep.subr.bf16.mxu1 %v5744_v15 }
 0x2b6   : > { %v949_v39 = vmax.f32 %v901_v35, 0.0 }
 0x2b7   : > { %v963_v40 = vpack.c.bf16 %v951_v37, %v950_v36 }
 0x2b8   : > { %v962_v41 = vpack.c.bf16 %v949_v39, %v948_v38  ;;  %v4425_v49 = vpop.f32.mrb[8].mxu1  ;;  %4870 = vmatpush3.bf16.msra.mxu1 %v5744_v15 }
 0x2b9   : > { %v922_v50 = vadd.f32 %v4425_v49, %v3951_v12  ;;  %v913_v51 = vpop.f32.mrb[9].mxu1 }
 0x2ba   : > { %v914_v52 = vadd.f32 %v3951_v12, %v913_v51  ;;  %v4426_v53 = vpop.f32.mrb[10].mxu1  ;;  %4439 = vmatprep.mubr.msk.bf16.mxu1 %vm822_vm0, %v962_v41 }
 0x2bb   : > { %v925_v54 = vadd.f32 %v4426_v53, %v3951_v12  ;;  %v916_v55 = vpop.f32.mrb[11].mxu1  ;;  %4440 = vmatmul.mubr.msk.bf16.gmra.mrb[20].mxu1 %vm822_vm0, %v963_v40  ;;  %v954_v57 = vmax.f32 %v922_v50, 0.0 }
 0x2bc   : > { %v917_v56 = vadd.f32 %v3951_v12, %v916_v55  ;;  %v952_v59 = vmax.f32 %v914_v52, 0.0 }
 0x2bd   : > { %v955_v58 = vmax.f32 %v925_v54, 0.0 }
 0x2be   : > { %v953_v60 = vmax.f32 %v917_v56, 0.0 }
 0x2bf   : > { %v965_v61 = vpack.c.bf16 %v955_v58, %v954_v57 }
 0x2c0   : > { %v964_v62 = vpack.c.bf16 %v953_v60, %v952_v59  ;;  %v4429_v63 = vpop.f32.mrb[12].mxu1 }
 0x2c1   : > { %v938_v0 = vadd.f32 %v4429_v63, %v3951_v12  ;;  %v929_v1 = vpop.f32.mrb[13].mxu1 }
 0x2c2   : > { %v930_v2 = vadd.f32 %v3951_v12, %v929_v1  ;;  %v4430_v3 = vpop.f32.mrb[14].mxu1  ;;  %4443 = vmatprep.mubr.msk.bf16.mxu1 %vm822_vm0, %v964_v62 }
 0x2c3   : > { %v941_v4 = vadd.f32 %v4430_v3, %v3951_v12  ;;  %v932_v5 = vpop.f32.mrb[15].mxu1  ;;  %4444 = vmatmul.mubr.msk.bf16.gmra.mrb[24].mxu1 %vm822_vm0, %v965_v61  ;;  %v958_v7 = vmax.f32 %v938_v0, 0.0 }
 0x2c4   : > { %v933_v6 = vadd.f32 %v3951_v12, %v932_v5  ;;  %v956_v9 = vmax.f32 %v930_v2, 0.0  ;;  %v3962_v12 = vld [vmem:[#allocation9] ss:$0 sm:$0xff] }
 0x2c5   : > { %v959_v8 = vmax.f32 %v941_v4, 0.0 }
 0x2c6   : > { %v957_v10 = vmax.f32 %v933_v6, 0.0 }
 0x2c7   : > { %v967_v11 = vpack.c.bf16 %v959_v8, %v958_v7 }
 0x2c8   : > { %v966_v13 = vpack.c.bf16 %v957_v10, %v956_v9 }
 0x2ca   : > { %4447 = vmatprep.mubr.msk.bf16.mxu1 %vm822_vm0, %v966_v13 }
 0x2cb   : > { %4448 = vmatmul.mubr.msk.bf16.gmra.mrb[28].mxu1 %vm822_vm0, %v967_v11 }
 0x386   : > { %v4437_v16 = vpop.f32.mrb[16].mxu1 }
 0x387   : > { %v1056_v17 = vadd.f32 %v4437_v16, %v3962_v12  ;;  %v1047_v18 = vpop.f32.mrb[17].mxu1 }
 0x388   : > { %v1048_v19 = vadd.f32 %v3962_v12, %v1047_v18  ;;  %v4438_v20 = vpop.f32.mrb[18].mxu1 }
 0x389   : > { %v1059_v21 = vadd.f32 %v4438_v20, %v3962_v12  ;;  %v1050_v22 = vpop.f32.mrb[19].mxu1  ;;  %v1112_v24 = vmax.f32 %v1056_v17, 0.0 }
 0x38a   : > { %v1051_v23 = vadd.f32 %v3962_v12, %v1050_v22  ;;  %v1110_v26 = vmax.f32 %v1048_v19, 0.0 }
 0x38b   : > { %v1113_v25 = vmax.f32 %v1059_v21, 0.0 }
 0x38c   : > { %v1111_v28 = vmax.f32 %v1051_v23, 0.0 }
 0x38d   : > { %v5749_v29 = vpack.c.bf16 %v1113_v25, %v1112_v24 }
 0x38e   : > { %v5751_v30 = vpack.c.bf16 %v1111_v28, %v1110_v26  ;;  %v4441_v31 = vpop.f32.mrb[20].mxu1 }
 0x38f   : > { %v1072_v32 = vadd.f32 %v4441_v31, %v3962_v12  ;;  %v1063_v33 = vpop.f32.mrb[21].mxu1 }
 0x390   : > { %v1064_v34 = vadd.f32 %v3962_v12, %v1063_v33  ;;  %v4442_v35 = vpop.f32.mrb[22].mxu1  ;;  %4451 = vmatprep.subr.bf16.mxu0 %v5751_v30 }
 0x391   : > { %v1075_v36 = vadd.f32 %v4442_v35, %v3962_v12  ;;  %v1066_v37 = vpop.f32.mrb[23].mxu1  ;;  %4452 = vmatpush3.bf16.msra.mxu0 %v5751_v30  ;;  %v1116_v39 = vmax.f32 %v1072_v32, 0.0 }
 0x392   : > { %v1067_v38 = vadd.f32 %v3962_v12, %v1066_v37  ;;  %4453 = vmatprep.subr.bf16.mxu0 %v5749_v29  ;;  %v1114_v41 = vmax.f32 %v1064_v34, 0.0 }
 0x393   : > { %v1117_v40 = vmax.f32 %v1075_v36, 0.0 }
 0x394   : > { %v1115_v49 = vmax.f32 %v1067_v38, 0.0 }
 0x395   : > { %v5756_v50 = vpack.c.bf16 %v1117_v40, %v1116_v39  ;;  %4454 = vmatpush3.bf16.msra.mxu0 %v5749_v29 }
 0x396   : > { %v5759_v51 = vpack.c.bf16 %v1115_v49, %v1114_v41  ;;  %v4445_v52 = vpop.f32.mrb[24].mxu1 }
 0x397   : > { %v1088_v53 = vadd.f32 %v4445_v52, %v3962_v12  ;;  %v1079_v54 = vpop.f32.mrb[25].mxu1  ;;  %v5059_v52 = vld [vmem:[#allocation8 + $0x10] sm:$0xff]  }
 0x398   : > { %v1080_v55 = vadd.f32 %v3962_v12, %v1079_v54  ;;  %v4446_v56 = vpop.f32.mrb[26].mxu1  ;;  %4455 = vmatprep.subr.bf16.mxu0 %v5759_v51  ;;  %v3973_v54 = vld [vmem:[#allocation6 + $0x1] ss:$0 sm:$0xff] }
 0x399   : > { %v1091_v57 = vadd.f32 %v4446_v56, %v3962_v12  ;;  %v1082_v58 = vpop.f32.mrb[27].mxu1  ;;  %4456 = vmatpush3.bf16.msra.mxu0 %v5759_v51  ;;  %v1120_v60 = vmax.f32 %v1088_v53, 0.0  ;;  %v5060_v53 = vld [vmem:[#allocation8 + $0x18] sm:$0xff]  }
 0x39a   : > { %v1083_v59 = vadd.f32 %v3962_v12, %v1082_v58  ;;  %4457 = vmatprep.subr.bf16.mxu0 %v5756_v50  ;;  %v1118_v62 = vmax.f32 %v1080_v55, 0.0 }
 0x39b   : > { %v1121_v61 = vmax.f32 %v1091_v57, 0.0 }
 0x39c   : > { %v1119_v63 = vmax.f32 %v1083_v59, 0.0 }
 0x39d   : > { %v5764_v0 = vpack.c.bf16 %v1121_v61, %v1120_v60  ;;  %4458 = vmatpush3.bf16.msra.mxu0 %v5756_v50 }
 0x39e   : > { %v5767_v1 = vpack.c.bf16 %v1119_v63, %v1118_v62  ;;  %v4449_v2 = vpop.f32.mrb[28].mxu1 }
 0x39f   : > { %v1104_v3 = vadd.f32 %v4449_v2, %v3962_v12  ;;  %v1095_v4 = vpop.f32.mrb[29].mxu1 }
 0x3a0   : > { %v1096_v5 = vadd.f32 %v3962_v12, %v1095_v4  ;;  %v4450_v6 = vpop.f32.mrb[30].mxu1  ;;  %4459 = vmatprep.subr.bf16.mxu0 %v5767_v1 }
 0x3a1   : > { %v1107_v7 = vadd.f32 %v4450_v6, %v3962_v12  ;;  %v1098_v8 = vpop.f32.mrb[31].mxu1  ;;  %4460 = vmatpush3.bf16.msra.mxu0 %v5767_v1  ;;  %v1124_v10 = vmax.f32 %v1104_v3, 0.0 }
 0x3a2   : > { %v1099_v9 = vadd.f32 %v3962_v12, %v1098_v8  ;;  %4461 = vmatprep.subr.bf16.mxu0 %v5764_v0  ;;  %v1122_v13 = vmax.f32 %v1096_v5, 0.0 }
 0x3a3   : > { %v1125_v11 = vmax.f32 %v1107_v7, 0.0 }
 0x3a4   : > { %v1123_v16 = vmax.f32 %v1099_v9, 0.0 }
 0x3a5   : > { %v5772_v17 = vpack.c.bf16 %v1125_v11, %v1124_v10  ;;  %4462 = vmatpush3.bf16.msra.mxu0 %v5764_v0 }
 0x3a6   : > { %v5775_v18 = vpack.c.bf16 %v1123_v16, %v1122_v13 }
 0x3a8   : > { %4463 = vmatprep.subr.bf16.mxu0 %v5775_v18 }
 0x3a9   : > { %4464 = vmatpush3.bf16.msra.mxu0 %v5775_v18 }
 0x3aa   : > { %4465 = vmatprep.subr.bf16.mxu0 %v5772_v17 }
 0x3ad   : > { %4466 = vmatpush3.bf16.msra.mxu0 %v5772_v17 }
 0x3ae   : > { %4483 = vmatprep.subr.bf16.mxu0 %v5741_v14 }
 0x3b0   : > { %4468 = vmatmul.mubr.bf16.vlgmr.msra.gmra.mrb[16].mxu0 %v5697_v42 }
 0x3b1   : > { %4471 = vmatprep.mubr.bf16.mxu0 %v5700_v43  ;;  %4484 = vmatpush3.bf16.msra.mxu0 %v5741_v14 }
 0x3b2   : > { %4485 = vmatprep.subr.bf16.mxu0 %v5744_v15 }
 0x3b5   : > { %4486 = vmatpush3.bf16.msra.mxu0 %v5744_v15 }
 0x3b6   : > { %4503 = vmatprep.subr.bf16.mxu0 %v5059_v52 }
 0x3b8   : > { %4472 = vmatmul.mubr.bf16.gmra.mrb[20].mxu0 %v5705_v44 }
 0x3b9   : > { %4475 = vmatprep.mubr.bf16.mxu0 %v5708_v45 }
 0x3c0   : > { %4476 = vmatmul.mubr.bf16.gmra.mrb[24].mxu0 %v5713_v46 }
 0x3c1   : > { %4479 = vmatprep.mubr.bf16.mxu0 %v5716_v47 }
 0x3c8   : > { %4480 = vmatmul.mubr.bf16.gmra.mrb[28].mxu0 %v5721_v48 }
 0x483   : > { %v4469_v12 = vpop.f32.mrb[16].mxu0 }
 0x484   : > { %v1172_v19 = vpop.f32.mrb[17].mxu0 }
 0x485   : > { %v4470_v20 = vpop.f32.mrb[18].mxu0 }
 0x486   : > { %v1236_v21 = vpack.c.bf16 %v4470_v20, %v4469_v12  ;;  %v1175_v22 = vpop.f32.mrb[19].mxu0 }
 0x487   : > { %v1235_v14 = vpack.c.bf16 %v1175_v22, %v1172_v19 }
 0x489   : > { %4487 = vmatprep.mubr.msk.bf16.mxu0 %vm822_vm0, %v1235_v14 }
 0x48a   : > { %4488 = vmatmul.mubr.msk.bf16.vlgmr.msra.gmra.mrb[32].mxu0 %vm822_vm0, %v1236_v21 }
 0x48b   : > { %v4473_v15 = vpop.f32.mrb[20].mxu0  ;;  %4504 = vmatpush3.bf16.msra.mxu0 %v5059_v52 }
 0x48c   : > { %v1188_v23 = vpop.f32.mrb[21].mxu0  ;;  %4505 = vmatprep.subr.bf16.mxu0 %v5060_v53 }
 0x48d   : > { %v4474_v24 = vpop.f32.mrb[22].mxu0 }
 0x48e   : > { %v1238_v25 = vpack.c.bf16 %v4474_v24, %v4473_v15  ;;  %v1191_v26 = vpop.f32.mrb[23].mxu0 }
 0x48f   : > { %v1237_v28 = vpack.c.bf16 %v1191_v26, %v1188_v23  ;;  %4506 = vmatpush3.bf16.msra.mxu0 %v5060_v53 }
 0x491   : > { %4491 = vmatprep.mubr.msk.bf16.mxu1 %vm822_vm0, %v1237_v28 }
 0x492   : > { %4492 = vmatmul.mubr.msk.bf16.vlgmr.msra.gmra.mrb[32].mxu1 %vm822_vm0, %v1238_v25 }
 0x493   : > { %v4477_v31 = vpop.f32.mrb[24].mxu0 }
 0x494   : > { %v1204_v32 = vpop.f32.mrb[25].mxu0 }
 0x495   : > { %v4478_v33 = vpop.f32.mrb[26].mxu0 }
 0x496   : > { %v1240_v34 = vpack.c.bf16 %v4478_v33, %v4477_v31  ;;  %v1207_v35 = vpop.f32.mrb[27].mxu0 }
 0x497   : > { %v1239_v36 = vpack.c.bf16 %v1207_v35, %v1204_v32 }
 0x499   : > { %4495 = vmatprep.mubr.msk.bf16.mxu1 %vm822_vm0, %v1239_v36 }
 0x49a   : > { %4496 = vmatmul.mubr.msk.bf16.gmra.mrb[36].mxu1 %vm822_vm0, %v1240_v34 }
 0x49b   : > { %v4481_v37 = vpop.f32.mrb[28].mxu0 }
 0x49c   : > { %v1220_v38 = vpop.f32.mrb[29].mxu0 }
 0x49d   : > { %v4482_v39 = vpop.f32.mrb[30].mxu0 }
 0x49e   : > { %v1242_v40 = vpack.c.bf16 %v4482_v39, %v4481_v37  ;;  %v1223_v41 = vpop.f32.mrb[31].mxu0 }
 0x49f   : > { %v1241_v49 = vpack.c.bf16 %v1223_v41, %v1220_v38 }
 0x4a1   : > { %4499 = vmatprep.mubr.msk.bf16.mxu1 %vm822_vm0, %v1241_v49 }
 0x4a2   : > { %4500 = vmatmul.mubr.msk.bf16.gmra.mrb[40].mxu1 %vm822_vm0, %v1242_v40 }
 0x55d   : > { %v4489_v55 = vpop.f32.mrb[32].mxu0 }
 0x55e   : > { %v1332_v56 = vadd.f32 %v4489_v55, %v3973_v54  ;;  %v1323_v57 = vpop.f32.mrb[33].mxu0 }
 0x55f   : > { %v1324_v58 = vadd.f32 %v3973_v54, %v1323_v57  ;;  %v4490_v59 = vpop.f32.mrb[34].mxu0 }
 0x560   : > { %v1335_v60 = vadd.f32 %v4490_v59, %v3973_v54  ;;  %v1326_v61 = vpop.f32.mrb[35].mxu0  ;;  %v1388_v63 = vmax.f32 %v1332_v56, 0.0 }
 0x561   : > { %v1327_v62 = vadd.f32 %v3973_v54, %v1326_v61  ;;  %v1386_v3 = vmax.f32 %v1324_v58, 0.0 }
 0x562   : > { %v1389_v2 = vmax.f32 %v1335_v60, 0.0 }
 0x563   : > { %v1387_v4 = vmax.f32 %v1327_v62, 0.0 }
 0x564   : > { %v1403_v5 = vpack.c.bf16 %v1389_v2, %v1388_v63  ;;  %v5061_v2 = vld [vmem:[%s6117_s7 + $0x10] sm:$0xff]  }
 0x565   : > { %v1402_v6 = vpack.c.bf16 %v1387_v4, %v1386_v3  ;;  %v4493_v7 = vpop.f32.mrb[32].mxu1  ;;  %4523 = vmatprep.subr.bf16.mxu1 %v5061_v2  ;;  %v5063_v3 = vld [vmem:[%s6117_s7] sm:$0xff]   ;;  %v5818_v4 = vld [vmem:[#allocation9 + $0x1] ss:$0 sm:$0xff] }
 0x566   : > { %v1348_v8 = vadd.f32 %v4493_v7, %v3973_v54  ;;  %v1339_v9 = vpop.f32.mrb[33].mxu1  ;;  %4524 = vmatpush3.bf16.msra.mxu1 %v5061_v2 }
 0x567   : > { %v1340_v10 = vadd.f32 %v3973_v54, %v1339_v9  ;;  %v4494_v11 = vpop.f32.mrb[34].mxu1  ;;  %4507 = vmatprep.mubr.msk.bf16.mxu0 %vm822_vm0, %v1402_v6 }
 0x568   : > { %v1351_v13 = vadd.f32 %v4494_v11, %v3973_v54  ;;  %v1342_v16 = vpop.f32.mrb[35].mxu1  ;;  %4508 = vmatmul.mubr.msk.bf16.vlgmr.msra.gmra.mrb[36].mxu0 %vm822_vm0, %v1403_v5  ;;  %v1392_v19 = vmax.f32 %v1348_v8, 0.0 }
 0x569   : > { %v1343_v12 = vadd.f32 %v3973_v54, %v1342_v16  ;;  %v1390_v21 = vmax.f32 %v1340_v10, 0.0 }
 0x56a   : > { %v1393_v20 = vmax.f32 %v1351_v13, 0.0 }
 0x56b   : > { %v1391_v22 = vmax.f32 %v1343_v12, 0.0 }
 0x56c   : > { %v1405_v14 = vpack.c.bf16 %v1393_v20, %v1392_v19 }
 0x56d   : > { %v1404_v15 = vpack.c.bf16 %v1391_v22, %v1390_v21  ;;  %v4497_v23 = vpop.f32.mrb[36].mxu1 }
 0x56e   : > { %v1364_v24 = vadd.f32 %v4497_v23, %v3973_v54  ;;  %v1355_v25 = vpop.f32.mrb[37].mxu1  ;;  %v5064_v23 = vld [vmem:[%s6117_s7 + $0x8] sm:$0xff]  }
 0x56f   : > { %v1356_v26 = vadd.f32 %v3973_v54, %v1355_v25  ;;  %v4498_v28 = vpop.f32.mrb[38].mxu1  ;;  %4511 = vmatprep.mubr.msk.bf16.mxu0 %vm822_vm0, %v1404_v15 }
 0x570   : > { %v1367_v31 = vadd.f32 %v4498_v28, %v3973_v54  ;;  %v1358_v32 = vpop.f32.mrb[39].mxu1  ;;  %4512 = vmatmul.mubr.msk.bf16.gmra.mrb[40].mxu0 %vm822_vm0, %v1405_v14  ;;  %v1396_v34 = vmax.f32 %v1364_v24, 0.0 }
 0x571   : > { %v1359_v33 = vadd.f32 %v3973_v54, %v1358_v32  ;;  %v1394_v36 = vmax.f32 %v1356_v26, 0.0 }
 0x572   : > { %v1397_v35 = vmax.f32 %v1367_v31, 0.0 }
 0x573   : > { %v1395_v37 = vmax.f32 %v1359_v33, 0.0 }
 0x574   : > { %v1407_v38 = vpack.c.bf16 %v1397_v35, %v1396_v34 }
 0x575   : > { %v1406_v39 = vpack.c.bf16 %v1395_v37, %v1394_v36  ;;  %v4501_v40 = vpop.f32.mrb[40].mxu1 }
 0x576   : > { %v1380_v41 = vadd.f32 %v4501_v40, %v3973_v54  ;;  %v1371_v49 = vpop.f32.mrb[41].mxu1 }
 0x577   : > { %v1372_v52 = vadd.f32 %v3973_v54, %v1371_v49  ;;  %v4502_v53 = vpop.f32.mrb[42].mxu1  ;;  %4515 = vmatprep.mubr.msk.bf16.mxu0 %vm822_vm0, %v1406_v39 }
 0x578   : > { %v1383_v55 = vadd.f32 %v4502_v53, %v3973_v54  ;;  %v1374_v56 = vpop.f32.mrb[43].mxu1  ;;  %4516 = vmatmul.mubr.msk.bf16.gmra.mrb[44].mxu0 %vm822_vm0, %v1407_v38  ;;  %v1400_v58 = vmax.f32 %v1380_v41, 0.0 }
 0x579   : > { %v1375_v57 = vadd.f32 %v3973_v54, %v1374_v56  ;;  %v1398_v60 = vmax.f32 %v1372_v52, 0.0  ;;  %v5062_v54 = vld [vmem:[%s6117_s7 + $0x18] sm:$0xff]  }
 0x57a   : > { %v1401_v59 = vmax.f32 %v1383_v55, 0.0  ;;  %4525 = vmatprep.subr.bf16.mxu1 %v5062_v54 }
 0x57b   : > { %v1399_v61 = vmax.f32 %v1375_v57, 0.0  ;;  %4526 = vmatpush3.bf16.msra.mxu1 %v5062_v54 }
 0x57c   : > { %v1409_v62 = vpack.c.bf16 %v1401_v59, %v1400_v58  ;;  %4543 = vmatprep.subr.bf16.mxu1 %v5063_v3 }
 0x57d   : > { %v1408_v63 = vpack.c.bf16 %v1399_v61, %v1398_v60 }
 0x57f   : > { %4519 = vmatprep.mubr.msk.bf16.mxu0 %vm822_vm0, %v1408_v63 }
 0x580   : > { %4520 = vmatmul.mubr.msk.bf16.gmra.mrb[48].mxu0 %vm822_vm0, %v1409_v62 }
 0x581   : > { %4579 = vmatprep.mubr.bf16.mxu0 %v5685_v27 }
 0x63b   : > { %v4509_v27 = vpop.f32.mrb[36].mxu0 }
 0x63c   : > { %v1499_v5 = vadd.f32 %v4509_v27, %v5818_v4  ;;  %v1490_v6 = vpop.f32.mrb[37].mxu0 }
 0x63d   : > { %v1491_v7 = vadd.f32 %v5818_v4, %v1490_v6  ;;  %v4510_v8 = vpop.f32.mrb[38].mxu0 }
 0x63e   : > { %v1502_v9 = vadd.f32 %v4510_v8, %v5818_v4  ;;  %v1493_v10 = vpop.f32.mrb[39].mxu0  ;;  %v1555_v13 = vmax.f32 %v1499_v5, 0.0 }
 0x63f   : > { %v1494_v11 = vadd.f32 %v5818_v4, %v1493_v10  ;;  %v1553_v12 = vmax.f32 %v1491_v7, 0.0 }
 0x640   : > { %v1556_v16 = vmax.f32 %v1502_v9, 0.0 }
 0x641   : > { %v1554_v19 = vmax.f32 %v1494_v11, 0.0 }
 0x642   : > { %v1570_v20 = vpack.c.bf16 %v1556_v16, %v1555_v13  ;;  %v5065_v16 = vld [vmem:[#allocation3 + $0x20] sm:$0xff]  }
 0x643   : > { %v1569_v21 = vpack.c.bf16 %v1554_v19, %v1553_v12  ;;  %v4513_v22 = vpop.f32.mrb[40].mxu0 }
 0x644   : > { %v1515_v14 = vadd.f32 %v4513_v22, %v5818_v4  ;;  %v1506_v15 = vpop.f32.mrb[41].mxu0 }
 0x645   : > { %v1507_v24 = vadd.f32 %v5818_v4, %v1506_v15  ;;  %v4514_v25 = vpop.f32.mrb[42].mxu0  ;;  %4527 = vmatprep.mubr.msk.bf16.mxu1 %vm822_vm0, %v1569_v21  ;;  %4563 = vmatprep.subr.bf16.mxu0 %v1569_v21 }
 0x646   : > { %v1518_v26 = vadd.f32 %v4514_v25, %v5818_v4  ;;  %v1509_v28 = vpop.f32.mrb[43].mxu0  ;;  %4528 = vmatmul.mubr.msk.bf16.vlgmr.msra.gmra.mrb[44].mxu1 %vm822_vm0, %v1570_v20  ;;  %4564 = vmatpush3.bf16.msra.mxu0 %v1569_v21  ;;  %v1559_v32 = vmax.f32 %v1515_v14, 0.0 }
 0x647   : > { %v1510_v31 = vadd.f32 %v5818_v4, %v1509_v28  ;;  %4565 = vmatprep.subr.bf16.mxu0 %v1570_v20  ;;  %4544 = vmatpush3.bf16.msra.mxu1 %v5063_v3  ;;  %v1557_v34 = vmax.f32 %v1507_v24, 0.0  ;;  %v5879_v28 = vld [vmem:[%s5648_s14] sm:$0xff]  }
 0x648   : > { %v1560_v33 = vmax.f32 %v1518_v26, 0.0  ;;  %4545 = vmatprep.subr.bf16.mxu1 %v5064_v23 }
 0x649   : > { %v1558_v35 = vmax.f32 %v1510_v31, 0.0  ;;  %v4019_v31 = vld [vmem:[#allocation6 + $0x2] ss:$0 sm:$0xff] }
 0x64a   : > { %v1572_v36 = vpack.c.bf16 %v1560_v33, %v1559_v32  ;;  %4566 = vmatpush3.bf16.msra.mxu0 %v1570_v20 }
 0x64b   : > { %v1571_v37 = vpack.c.bf16 %v1558_v35, %v1557_v34  ;;  %v4517_v38 = vpop.f32.mrb[44].mxu0  ;;  %4546 = vmatpush3.bf16.msra.mxu1 %v5064_v23 }
 0x64c   : > { %v1531_v39 = vadd.f32 %v4517_v38, %v5818_v4  ;;  %v1522_v40 = vpop.f32.mrb[45].mxu0 }
 0x64d   : > { %v1523_v41 = vadd.f32 %v5818_v4, %v1522_v40  ;;  %v4518_v49 = vpop.f32.mrb[46].mxu0  ;;  %4531 = vmatprep.mubr.msk.bf16.mxu1 %vm822_vm0, %v1571_v37  ;;  %4567 = vmatprep.subr.bf16.mxu0 %v1571_v37 }
 0x64e   : > { %v1534_v52 = vadd.f32 %v4518_v49, %v5818_v4  ;;  %v1525_v53 = vpop.f32.mrb[47].mxu0  ;;  %4532 = vmatmul.mubr.msk.bf16.gmra.mrb[48].mxu1 %vm822_vm0, %v1572_v36  ;;  %4568 = vmatpush3.bf16.msra.mxu0 %v1571_v37  ;;  %v1563_v56 = vmax.f32 %v1531_v39, 0.0 }
 0x64f   : > { %v1526_v55 = vadd.f32 %v5818_v4, %v1525_v53  ;;  %4569 = vmatprep.subr.bf16.mxu0 %v1572_v36  ;;  %v1561_v58 = vmax.f32 %v1523_v41, 0.0 }
 0x650   : > { %v1564_v57 = vmax.f32 %v1534_v52, 0.0 }
 0x651   : > { %v1562_v59 = vmax.f32 %v1526_v55, 0.0 }
 0x652   : > { %v1574_v60 = vpack.c.bf16 %v1564_v57, %v1563_v56  ;;  %4570 = vmatpush3.bf16.msra.mxu0 %v1572_v36 }
 0x653   : > { %v1573_v61 = vpack.c.bf16 %v1562_v59, %v1561_v58  ;;  %v4521_v62 = vpop.f32.mrb[48].mxu0 }
 0x654   : > { %v1547_v63 = vadd.f32 %v4521_v62, %v5818_v4  ;;  %v1538_v2 = vpop.f32.mrb[49].mxu0 }
 0x655   : > { %v1539_v54 = vadd.f32 %v5818_v4, %v1538_v2  ;;  %v4522_v3 = vpop.f32.mrb[50].mxu0  ;;  %4535 = vmatprep.mubr.msk.bf16.mxu1 %vm822_vm0, %v1573_v61  ;;  %4571 = vmatprep.subr.bf16.mxu0 %v1573_v61 }
 0x656   : > { %v1550_v27 = vadd.f32 %v4522_v3, %v5818_v4  ;;  %v1541_v5 = vpop.f32.mrb[51].mxu0  ;;  %4536 = vmatmul.mubr.msk.bf16.gmra.mrb[52].mxu1 %vm822_vm0, %v1574_v60  ;;  %4572 = vmatpush3.bf16.msra.mxu0 %v1573_v61  ;;  %v1567_v7 = vmax.f32 %v1547_v63, 0.0 }
 0x657   : > { %v1542_v6 = vadd.f32 %v5818_v4, %v1541_v5  ;;  %4573 = vmatprep.subr.bf16.mxu0 %v1574_v60  ;;  %v1565_v9 = vmax.f32 %v1539_v54, 0.0  ;;  %v5066_v4 = vld [vmem:[#allocation3 + $0x28] sm:$0xff]  }
 0x658   : > { %v1568_v8 = vmax.f32 %v1550_v27, 0.0 }
 0x659   : > { %v1566_v10 = vmax.f32 %v1542_v6, 0.0 }
 0x65a   : > { %v1576_v11 = vpack.c.bf16 %v1568_v8, %v1567_v7  ;;  %4574 = vmatpush3.bf16.msra.mxu0 %v1574_v60 }
 0x65b   : > { %v1575_v13 = vpack.c.bf16 %v1566_v10, %v1565_v9 }
 0x65d   : > { %4539 = vmatprep.mubr.msk.bf16.mxu1 %vm822_vm0, %v1575_v13  ;;  %4575 = vmatprep.subr.bf16.mxu0 %v1575_v13 }
 0x65e   : > { %4540 = vmatmul.mubr.msk.bf16.gmra.mrb[56].mxu1 %vm822_vm0, %v1576_v11  ;;  %4576 = vmatpush3.bf16.msra.mxu0 %v1575_v13 }
 0x65f   : > { %4547 = vmatprep.mubr.msk.bf16.mxu1 %vm822_vm0, %v5751_v30  ;;  %4577 = vmatprep.subr.bf16.mxu0 %v1576_v11 }
 0x662   : > { %4578 = vmatpush3.bf16.msra.mxu0 %v1576_v11 }
 0x663   : > { %4595 = vmatprep.subr.bf16.mxu0 %v5065_v16 }
 0x665   : > { %4580 = vmatmul.mubr.bf16.vlgmr.msra.gmra.mrb[52].mxu0 %v5697_v42  ;;  %v5067_v42 = vld [vmem:[#allocation8 + $0x20] sm:$0xff]  }
 0x666   : > { %4548 = vmatmul.mubr.msk.bf16.vlgmr.msra.gmra.mrb[44].mxu1 %vm822_vm0, %v5749_v29  ;;  %4583 = vmatprep.mubr.bf16.mxu0 %v5700_v43  ;;  %v5068_v43 = vld [vmem:[#allocation8 + $0x28] sm:$0xff]  }
 0x667   : > { %4551 = vmatprep.mubr.msk.bf16.mxu1 %vm822_vm0, %v5759_v51  ;;  %4596 = vmatpush3.bf16.msra.mxu0 %v5065_v16 }
 0x668   : > { %4597 = vmatprep.subr.bf16.mxu0 %v5066_v4  ;;  %4615 = vmatprep.subr.bf16.mxu1 %v5067_v42 }
 0x669   : > { %4616 = vmatpush3.bf16.msra.mxu1 %v5067_v42 }
 0x66a   : > { %4617 = vmatprep.subr.bf16.mxu1 %v5068_v43 }
 0x66b   : > { %4598 = vmatpush3.bf16.msra.mxu0 %v5066_v4 }
 0x66d   : > { %4584 = vmatmul.mubr.bf16.gmra.mrb[56].mxu0 %v5705_v44  ;;  %4618 = vmatpush3.bf16.msra.mxu1 %v5068_v43 }
 0x66e   : > { %4552 = vmatmul.mubr.msk.bf16.gmra.mrb[48].mxu1 %vm822_vm0, %v5756_v50  ;;  %4587 = vmatprep.mubr.bf16.mxu0 %v5708_v45 }
 0x66f   : > { %4555 = vmatprep.mubr.msk.bf16.mxu1 %vm822_vm0, %v5767_v1 }
 0x675   : > { %4588 = vmatmul.mubr.bf16.gmra.mrb[60].mxu0 %v5713_v46 }
 0x676   : > { %4556 = vmatmul.mubr.msk.bf16.gmra.mrb[52].mxu1 %vm822_vm0, %v5764_v0  ;;  %4591 = vmatprep.mubr.bf16.mxu0 %v5716_v47 }
 0x677   : > { %4559 = vmatprep.mubr.msk.bf16.mxu1 %vm822_vm0, %v5775_v18 }
 0x67d   : > { %4592 = vmatmul.mubr.bf16.gmra.mrb[64].mxu0 %v5721_v48 }
 0x67e   : > { %4560 = vmatmul.mubr.msk.bf16.gmra.mrb[56].mxu1 %vm822_vm0, %v5772_v17 }
 0x738   : > { %v4581_v44 = vpop.f32.mrb[52].mxu0 }
 0x739   : > { %v1882_v45 = vpop.f32.mrb[53].mxu0 }
 0x73a   : > { %v4582_v46 = vpop.f32.mrb[54].mxu0 }
 0x73b   : > { %v1946_v29 = vpack.c.bf16 %v4582_v46, %v4581_v44  ;;  %v1885_v30 = vpop.f32.mrb[55].mxu0 }
 0x73c   : > { %v1945_v47 = vpack.c.bf16 %v1885_v30, %v1882_v45 }
 0x73e   : > { %4599 = vmatprep.mubr.msk.bf16.mxu0 %vm822_vm0, %v1945_v47 }
 0x73f   : > { %4600 = vmatmul.mubr.msk.bf16.vlgmr.msra.gmra.mrb[68].mxu0 %vm822_vm0, %v1946_v29 }
 0x740   : > { %v4585_v48 = vpop.f32.mrb[56].mxu0 }
 0x741   : > { %v1898_v50 = vpop.f32.mrb[57].mxu0 }
 0x742   : > { %v4586_v51 = vpop.f32.mrb[58].mxu0 }
 0x743   : > { %v1948_v0 = vpack.c.bf16 %v4586_v51, %v4585_v48  ;;  %v1901_v1 = vpop.f32.mrb[59].mxu0 }
 0x744   : > { %v1947_v17 = vpack.c.bf16 %v1901_v1, %v1898_v50 }
 0x746   : > { %4603 = vmatprep.mubr.msk.bf16.mxu0 %vm822_vm0, %v1947_v17 }
 0x747   : > { %4604 = vmatmul.mubr.msk.bf16.gmra.mrb[72].mxu0 %vm822_vm0, %v1948_v0 }
 0x748   : > { %v4589_v18 = vpop.f32.mrb[60].mxu0 }
 0x749   : > { %v1914_v12 = vpop.f32.mrb[61].mxu0 }
 0x74a   : > { %v4590_v19 = vpop.f32.mrb[62].mxu0 }
 0x74b   : > { %v1950_v20 = vpack.c.bf16 %v4590_v19, %v4589_v18  ;;  %v1917_v21 = vpop.f32.mrb[63].mxu0 }
 0x74c   : > { %v1949_v22 = vpack.c.bf16 %v1917_v21, %v1914_v12 }
 0x74e   : > { %4607 = vmatprep.mubr.msk.bf16.mxu0 %vm822_vm0, %v1949_v22 }
 0x74f   : > { %4608 = vmatmul.mubr.msk.bf16.gmra.mrb[76].mxu0 %vm822_vm0, %v1950_v20 }
 0x750   : > { %v4593_v14 = vpop.f32.mrb[64].mxu0 }
 0x751   : > { %v1930_v15 = vpop.f32.mrb[65].mxu0 }
 0x752   : > { %v4594_v23 = vpop.f32.mrb[66].mxu0 }
 0x753   : > { %v1952_v24 = vpack.c.bf16 %v4594_v23, %v4593_v14  ;;  %v1933_v25 = vpop.f32.mrb[67].mxu0  ;;  %v5069_v14 = vld [vmem:[%s6117_s7 + $0x20] sm:$0xff]   ;;  %v5896_v23 = vld [vmem:[#allocation9 + $0x2] ss:$0 sm:$0xff] }
 0x754   : > { %v1951_v26 = vpack.c.bf16 %v1933_v25, %v1930_v15  ;;  %4635 = vmatprep.subr.bf16.mxu1 %v5069_v14  ;;  %v5070_v15 = vld [vmem:[%s6117_s7 + $0x28] sm:$0xff]  }
 0x756   : > { %4611 = vmatprep.mubr.msk.bf16.mxu0 %vm822_vm0, %v1951_v26 }
 0x757   : > { %4612 = vmatmul.mubr.msk.bf16.gmra.mrb[80].mxu0 %vm822_vm0, %v1952_v24 }
 0x758   : > { %4671 = vmatprep.mubr.bf16.mxu0 %v5879_v28 }
 0x812   : > { %v4601_v32 = vpop.f32.mrb[68].mxu0 }
 0x813   : > { %v2042_v33 = vadd.f32 %v4601_v32, %v4019_v31  ;;  %v2033_v34 = vpop.f32.mrb[69].mxu0 }
 0x814   : > { %v2034_v35 = vadd.f32 %v4019_v31, %v2033_v34  ;;  %v4602_v36 = vpop.f32.mrb[70].mxu0 }
 0x815   : > { %v2045_v37 = vadd.f32 %v4602_v36, %v4019_v31  ;;  %v2036_v38 = vpop.f32.mrb[71].mxu0  ;;  %v2098_v40 = vmax.f32 %v2042_v33, 0.0 }
 0x816   : > { %v2037_v39 = vadd.f32 %v4019_v31, %v2036_v38  ;;  %v2096_v49 = vmax.f32 %v2034_v35, 0.0 }
 0x817   : > { %v2099_v41 = vmax.f32 %v2045_v37, 0.0 }
 0x818   : > { %v2097_v52 = vmax.f32 %v2037_v39, 0.0 }
 0x819   : > { %v2113_v53 = vpack.c.bf16 %v2099_v41, %v2098_v40 }
 0x81a   : > { %v2112_v55 = vpack.c.bf16 %v2097_v52, %v2096_v49  ;;  %v4605_v56 = vpop.f32.mrb[72].mxu0 }
 0x81b   : > { %v2058_v57 = vadd.f32 %v4605_v56, %v4019_v31  ;;  %v2049_v58 = vpop.f32.mrb[73].mxu0 }
 0x81c   : > { %v2050_v59 = vadd.f32 %v4019_v31, %v2049_v58  ;;  %v4606_v60 = vpop.f32.mrb[74].mxu0  ;;  %4619 = vmatprep.mubr.msk.bf16.mxu1 %vm822_vm0, %v2112_v55 }
 0x81d   : > { %v2061_v61 = vadd.f32 %v4606_v60, %v4019_v31  ;;  %v2052_v62 = vpop.f32.mrb[75].mxu0  ;;  %4620 = vmatmul.mubr.msk.bf16.vlgmr.msra.gmra.mrb[60].mxu1 %vm822_vm0, %v2113_v53  ;;  %v2102_v2 = vmax.f32 %v2058_v57, 0.0 }
 0x81e   : > { %v2053_v63 = vadd.f32 %v4019_v31, %v2052_v62  ;;  %v2100_v3 = vmax.f32 %v2050_v59, 0.0  ;;  %4636 = vmatpush3.bf16.msra.mxu1 %v5069_v14  ;;  %v5931_v14 = vld [vmem:[%s5648_s14 + $0x18] sm:$0xff]  }
 0x81f   : > { %v2103_v54 = vmax.f32 %v2061_v61, 0.0  ;;  %4637 = vmatprep.subr.bf16.mxu1 %v5070_v15 }
 0x820   : > { %v2101_v27 = vmax.f32 %v2053_v63, 0.0 }
 0x821   : > { %v2115_v5 = vpack.c.bf16 %v2103_v54, %v2102_v2 }
 0x822   : > { %v2114_v6 = vpack.c.bf16 %v2101_v27, %v2100_v3  ;;  %v4609_v7 = vpop.f32.mrb[76].mxu0  ;;  %4638 = vmatpush3.bf16.msra.mxu1 %v5070_v15  ;;  %v5935_v15 = vld [vmem:[%s5648_s14 + $0x20] sm:$0xff]  }
 0x823   : > { %v2074_v8 = vadd.f32 %v4609_v7, %v4019_v31  ;;  %v2065_v9 = vpop.f32.mrb[77].mxu0 }
 0x824   : > { %v2066_v10 = vadd.f32 %v4019_v31, %v2065_v9  ;;  %v4610_v11 = vpop.f32.mrb[78].mxu0  ;;  %4623 = vmatprep.mubr.msk.bf16.mxu1 %vm822_vm0, %v2114_v6 }
 0x825   : > { %v2077_v13 = vadd.f32 %v4610_v11, %v4019_v31  ;;  %v2068_v16 = vpop.f32.mrb[79].mxu0  ;;  %4624 = vmatmul.mubr.msk.bf16.gmra.mrb[64].mxu1 %vm822_vm0, %v2115_v5  ;;  %v2106_v42 = vmax.f32 %v2074_v8, 0.0 }
 0x826   : > { %v2069_v4 = vadd.f32 %v4019_v31, %v2068_v16  ;;  %v2104_v44 = vmax.f32 %v2066_v10, 0.0 }
 0x827   : > { %v2107_v43 = vmax.f32 %v2077_v13, 0.0 }
 0x828   : > { %v2105_v45 = vmax.f32 %v2069_v4, 0.0 }
 0x829   : > { %v2117_v46 = vpack.c.bf16 %v2107_v43, %v2106_v42 }
 0x82a   : > { %v2116_v29 = vpack.c.bf16 %v2105_v45, %v2104_v44  ;;  %v4613_v30 = vpop.f32.mrb[80].mxu0 }
 0x82b   : > { %v2090_v47 = vadd.f32 %v4613_v30, %v4019_v31  ;;  %v2081_v48 = vpop.f32.mrb[81].mxu0 }
 0x82c   : > { %v2082_v50 = vadd.f32 %v4019_v31, %v2081_v48  ;;  %v4614_v51 = vpop.f32.mrb[82].mxu0  ;;  %4627 = vmatprep.mubr.msk.bf16.mxu1 %vm822_vm0, %v2116_v29 }
 0x82d   : > { %v2093_v0 = vadd.f32 %v4614_v51, %v4019_v31  ;;  %v2084_v1 = vpop.f32.mrb[83].mxu0  ;;  %4628 = vmatmul.mubr.msk.bf16.gmra.mrb[68].mxu1 %vm822_vm0, %v2117_v46  ;;  %v2110_v18 = vmax.f32 %v2090_v47, 0.0 }
 0x82e   : > { %v2085_v17 = vadd.f32 %v4019_v31, %v2084_v1  ;;  %v2108_v19 = vmax.f32 %v2082_v50, 0.0 }
 0x82f   : > { %v2111_v12 = vmax.f32 %v2093_v0, 0.0 }
 0x830   : > { %v2109_v20 = vmax.f32 %v2085_v17, 0.0 }
 0x831   : > { %v2119_v21 = vpack.c.bf16 %v2111_v12, %v2110_v18 }
 0x832   : > { %v2118_v22 = vpack.c.bf16 %v2109_v20, %v2108_v19  ;;  %v5071_v19 = vld [vmem:[#allocation3 + $0x30] sm:$0xff]   ;;  %v5072_v20 = vld [vmem:[#allocation3 + $0x38] sm:$0xff]  }
 0x834   : > { %4631 = vmatprep.mubr.msk.bf16.mxu1 %vm822_vm0, %v2118_v22  ;;  %v5927_v22 = vld [vmem:[%s5648_s14 + $0x10] sm:$0xff]  }
 0x835   : > { %4632 = vmatmul.mubr.msk.bf16.gmra.mrb[72].mxu1 %vm822_vm0, %v2119_v21  ;;  %v5923_v21 = vld [vmem:[%s5648_s14 + $0x8] sm:$0xff]  }
 0x8f0   : > { %v4621_v24 = vpop.f32.mrb[60].mxu1 }
 0x8f1   : > { %v2209_v25 = vadd.f32 %v4621_v24, %v5896_v23  ;;  %v2200_v26 = vpop.f32.mrb[61].mxu1  ;;  %v5943_v24 = vld [vmem:[%s5648_s14 + $0x30] sm:$0xff]  }
 0x8f2   : > { %v2201_v31 = vadd.f32 %v5896_v23, %v2200_v26  ;;  %v4622_v32 = vpop.f32.mrb[62].mxu1  ;;  %v5073_v26 = vld [vmem:[#allocation8 + $0x30] sm:$0xff]  }
 0x8f3   : > { %v2212_v33 = vadd.f32 %v4622_v32, %v5896_v23  ;;  %v2203_v34 = vpop.f32.mrb[63].mxu1  ;;  %v2265_v36 = vmax.f32 %v2209_v25, 0.0  ;;  %v5947_v25 = vld [vmem:[%s5648_s14 + $0x38] sm:$0xff]   ;;  %4707 = vmatprep.subr.bf16.mxu1 %v5073_v26 }
 0x8f4   : > { %v2204_v35 = vadd.f32 %v5896_v23, %v2203_v34  ;;  %v2263_v38 = vmax.f32 %v2201_v31, 0.0  ;;  %v5074_v31 = vld [vmem:[#allocation8 + $0x38] sm:$0xff]  }
 0x8f5   : > { %v2266_v37 = vmax.f32 %v2212_v33, 0.0 }
 0x8f6   : > { %v2264_v39 = vmax.f32 %v2204_v35, 0.0 }
 0x8f7   : > { %v2280_v40 = vpack.c.bf16 %v2266_v37, %v2265_v36 }
 0x8f8   : > { %v2279_v41 = vpack.c.bf16 %v2264_v39, %v2263_v38  ;;  %v4625_v49 = vpop.f32.mrb[64].mxu1 }
 0x8f9   : > { %v2225_v52 = vadd.f32 %v4625_v49, %v5896_v23  ;;  %v2216_v53 = vpop.f32.mrb[65].mxu1 }
 0x8fa   : > { %v2217_v55 = vadd.f32 %v5896_v23, %v2216_v53  ;;  %v4626_v56 = vpop.f32.mrb[66].mxu1  ;;  %4639 = vmatprep.mubr.msk.bf16.mxu1 %vm822_vm0, %v2279_v41  ;;  %4655 = vmatprep.subr.bf16.mxu0 %v2279_v41 }
 0x8fb   : > { %v2228_v57 = vadd.f32 %v4626_v56, %v5896_v23  ;;  %v2219_v58 = vpop.f32.mrb[67].mxu1  ;;  %4640 = vmatmul.mubr.msk.bf16.vlgmr.msra.gmra.mrb[44].mxu1 %vm822_vm0, %v2280_v40  ;;  %4656 = vmatpush3.bf16.msra.mxu0 %v2279_v41  ;;  %v2269_v60 = vmax.f32 %v2225_v52, 0.0 }
 0x8fc   : > { %v2220_v59 = vadd.f32 %v5896_v23, %v2219_v58  ;;  %4657 = vmatprep.subr.bf16.mxu0 %v2280_v40  ;;  %v2267_v62 = vmax.f32 %v2217_v55, 0.0  ;;  %4708 = vmatpush3.bf16.msra.mxu1 %v5073_v26 }
 0x8fd   : > { %v2270_v61 = vmax.f32 %v2228_v57, 0.0  ;;  %4709 = vmatprep.subr.bf16.mxu1 %v5074_v31 }
 0x8fe   : > { %v2268_v63 = vmax.f32 %v2220_v59, 0.0 }
 0x8ff   : > { %v2282_v2 = vpack.c.bf16 %v2270_v61, %v2269_v60  ;;  %4658 = vmatpush3.bf16.msra.mxu0 %v2280_v40 }
 0x900   : > { %v2281_v54 = vpack.c.bf16 %v2268_v63, %v2267_v62  ;;  %v4629_v3 = vpop.f32.mrb[68].mxu1  ;;  %4710 = vmatpush3.bf16.msra.mxu1 %v5074_v31 }
 0x901   : > { %v2241_v27 = vadd.f32 %v4629_v3, %v5896_v23  ;;  %v2232_v5 = vpop.f32.mrb[69].mxu1  ;;  %v4055_v3 = vld [vmem:[#allocation6 + $0x3] ss:$0 sm:$0xff] }
 0x902   : > { %v2233_v6 = vadd.f32 %v5896_v23, %v2232_v5  ;;  %v4630_v7 = vpop.f32.mrb[70].mxu1  ;;  %4643 = vmatprep.mubr.msk.bf16.mxu1 %vm822_vm0, %v2281_v54  ;;  %4659 = vmatprep.subr.bf16.mxu0 %v2281_v54 }
 0x903   : > { %v2244_v8 = vadd.f32 %v4630_v7, %v5896_v23  ;;  %v2235_v9 = vpop.f32.mrb[71].mxu1  ;;  %4644 = vmatmul.mubr.msk.bf16.gmra.mrb[48].mxu1 %vm822_vm0, %v2282_v2  ;;  %4660 = vmatpush3.bf16.msra.mxu0 %v2281_v54  ;;  %v2273_v11 = vmax.f32 %v2241_v27, 0.0 }
 0x904   : > { %v2236_v10 = vadd.f32 %v5896_v23, %v2235_v9  ;;  %4661 = vmatprep.subr.bf16.mxu0 %v2282_v2  ;;  %v2271_v16 = vmax.f32 %v2233_v6, 0.0 }
 0x905   : > { %v2274_v13 = vmax.f32 %v2244_v8, 0.0 }
 0x906   : > { %v2272_v4 = vmax.f32 %v2236_v10, 0.0 }
 0x907   : > { %v2284_v42 = vpack.c.bf16 %v2274_v13, %v2273_v11  ;;  %4662 = vmatpush3.bf16.msra.mxu0 %v2282_v2 }
 0x908   : > { %v2283_v43 = vpack.c.bf16 %v2272_v4, %v2271_v16  ;;  %v4633_v44 = vpop.f32.mrb[72].mxu1 }
 0x909   : > { %v2257_v45 = vadd.f32 %v4633_v44, %v5896_v23  ;;  %v2248_v46 = vpop.f32.mrb[73].mxu1 }
 0x90a   : > { %v2249_v29 = vadd.f32 %v5896_v23, %v2248_v46  ;;  %v4634_v30 = vpop.f32.mrb[74].mxu1  ;;  %4647 = vmatprep.mubr.msk.bf16.mxu1 %vm822_vm0, %v2283_v43  ;;  %4663 = vmatprep.subr.bf16.mxu0 %v2283_v43 }
 0x90b   : > { %v2260_v47 = vadd.f32 %v4634_v30, %v5896_v23  ;;  %v2251_v48 = vpop.f32.mrb[75].mxu1  ;;  %4648 = vmatmul.mubr.msk.bf16.gmra.mrb[52].mxu1 %vm822_vm0, %v2284_v42  ;;  %4664 = vmatpush3.bf16.msra.mxu0 %v2283_v43  ;;  %v2277_v51 = vmax.f32 %v2257_v45, 0.0 }
 0x90c   : > { %v2252_v50 = vadd.f32 %v5896_v23, %v2251_v48  ;;  %4665 = vmatprep.subr.bf16.mxu0 %v2284_v42  ;;  %v2275_v1 = vmax.f32 %v2249_v29, 0.0  ;;  %v5939_v23 = vld [vmem:[%s5648_s14 + $0x28] sm:$0xff]   ;;  %s597_s14 = sand.u32 1, %s6168_s10  }
 0x90d   : > { %v2278_v0 = vmax.f32 %v2260_v47, 0.0  ;;  %s3940_s3 = sshll.u32 %s597_s14, 3  ;;  %s3764_s11 = scalar_lea.sflag [#allocation5], %s597_s14 }
 0x90e   : > { %v2276_v17 = vmax.f32 %v2252_v50, 0.0  ;;  %s599_s16 = scalar_lea.vmem [#allocation12], %s3940_s3 }
 0x90f   : > { %v2286_v18 = vpack.c.bf16 %v2278_v0, %v2277_v51  ;;  %4666 = vmatpush3.bf16.msra.mxu0 %v2284_v42  ;;  %s3777_s28 = sshll.u32 %s599_s16, 4  ;;  %s6060_s28 = int_to_ptr.vmem [resolvable:$true] %s3777_s28 }
 0x910   : > { %v2285_v12 = vpack.c.bf16 %v2276_v17, %v2275_v1  ;;  %s5237_s19 = scalar_lea.vmem %s6060_s28, 128  ;;  %p5244_p4 = scmp.lt.s32.totalorder %s6060_s28, %s5242_s18 }
 0x911   : > { %p5238_p7 = scmp.ne.s32.totalorder %s6060_s28, %s5237_s19  ;;  %p5245_p2 = scmp.lt.s32.totalorder %s5243_s27, %s5237_s19 }
 0x912   : > { %4651 = vmatprep.mubr.msk.bf16.mxu1 %vm822_vm0, %v2285_v12  ;;  %4667 = vmatprep.subr.bf16.mxu0 %v2285_v12 }
 0x913   : > { %4652 = vmatmul.mubr.msk.bf16.gmra.mrb[56].mxu1 %vm822_vm0, %v2286_v18  ;;  %4668 = vmatpush3.bf16.msra.mxu0 %v2285_v12  ;;  %p5239_p13 = pnand %p5238_p7, %p6171_p6  ;;  %p5246_p10 = por %p5245_p2, %p5244_p4 }
 0x914   : > { %4669 = vmatprep.subr.bf16.mxu0 %v2286_v18 }
 0x915   : > { %p5240_p1 = pneg %p5239_p13 }
 0x917   : > { %4670 = vmatpush3.bf16.msra.mxu0 %v2286_v18  ;;  %p5247_p11 = pnand %p5246_p10, %p5240_p1 }
 0x918   : > { %4687 = vmatprep.subr.bf16.mxu0 %v5071_v19 }
 0x91a   : > { %4672 = vmatmul.mubr.bf16.vlgmr.msra.gmra.mrb[84].mxu0 %v5923_v21 }
 0x91b   : > { %4675 = vmatprep.mubr.bf16.mxu0 %v5927_v22  ;;  %4688 = vmatpush3.bf16.msra.mxu0 %v5071_v19 }
 0x91c   : > { %4689 = vmatprep.subr.bf16.mxu0 %v5072_v20 }
 0x91f   : > { %4690 = vmatpush3.bf16.msra.mxu0 %v5072_v20 }
 0x922   : > { %4676 = vmatmul.mubr.bf16.gmra.mrb[88].mxu0 %v5931_v14 }
 0x923   : > { %4679 = vmatprep.mubr.bf16.mxu0 %v5935_v15 }
 0x92a   : > { %4680 = vmatmul.mubr.bf16.gmra.mrb[92].mxu0 %v5939_v23 }
 0x92b   : > { %4683 = vmatprep.mubr.bf16.mxu0 %v5943_v24 }
 0x932   : > { %4684 = vmatmul.mubr.bf16.gmra.mrb[96].mxu0 %v5947_v25 }
 0x9ed   : > { %v4673_v32 = vpop.f32.mrb[84].mxu0 }
 0x9ee   : > { %v2475_v33 = vpop.f32.mrb[85].mxu0 }
 0x9ef   : > { %v4674_v34 = vpop.f32.mrb[86].mxu0 }
 0x9f0   : > { %v2539_v35 = vpack.c.bf16 %v4674_v34, %v4673_v32  ;;  %v2478_v36 = vpop.f32.mrb[87].mxu0 }
 0x9f1   : > { %v2538_v37 = vpack.c.bf16 %v2478_v36, %v2475_v33 }
 0x9f3   : > { %4691 = vmatprep.mubr.msk.bf16.mxu0 %vm822_vm0, %v2538_v37 }
 0x9f4   : > { %4692 = vmatmul.mubr.msk.bf16.vlgmr.msra.gmra.mrb[100].mxu0 %vm822_vm0, %v2539_v35 }
 0x9f5   : > { %v4677_v38 = vpop.f32.mrb[88].mxu0 }
 0x9f6   : > { %v2491_v39 = vpop.f32.mrb[89].mxu0 }
 0x9f7   : > { %v4678_v40 = vpop.f32.mrb[90].mxu0 }
 0x9f8   : > { %v2541_v41 = vpack.c.bf16 %v4678_v40, %v4677_v38  ;;  %v2494_v49 = vpop.f32.mrb[91].mxu0 }
 0x9f9   : > { %v2540_v52 = vpack.c.bf16 %v2494_v49, %v2491_v39 }
 0x9fb   : > { %4695 = vmatprep.mubr.msk.bf16.mxu0 %vm822_vm0, %v2540_v52 }
 0x9fc   : > { %4696 = vmatmul.mubr.msk.bf16.gmra.mrb[104].mxu0 %vm822_vm0, %v2541_v41 }
 0x9fd   : > { %v4681_v53 = vpop.f32.mrb[92].mxu0 }
 0x9fe   : > { %v2507_v55 = vpop.f32.mrb[93].mxu0 }
 0x9ff   : > { %v4682_v56 = vpop.f32.mrb[94].mxu0 }
 0xa00   : > { %v2543_v57 = vpack.c.bf16 %v4682_v56, %v4681_v53  ;;  %v2510_v58 = vpop.f32.mrb[95].mxu0 }
 0xa01   : > { %v2542_v59 = vpack.c.bf16 %v2510_v58, %v2507_v55 }
 0xa03   : > { %4699 = vmatprep.mubr.msk.bf16.mxu0 %vm822_vm0, %v2542_v59 }
 0xa04   : > { %4700 = vmatmul.mubr.msk.bf16.gmra.mrb[108].mxu0 %vm822_vm0, %v2543_v57 }
 0xa05   : > { %v4685_v60 = vpop.f32.mrb[96].mxu0 }
 0xa06   : > { %v2523_v61 = vpop.f32.mrb[97].mxu0 }
 0xa07   : > { %v4686_v62 = vpop.f32.mrb[98].mxu0 }
 0xa08   : > { %v2545_v63 = vpack.c.bf16 %v4686_v62, %v4685_v60  ;;  %v2526_v2 = vpop.f32.mrb[99].mxu0 }
 0xa09   : > { %v2544_v54 = vpack.c.bf16 %v2526_v2, %v2523_v61 }
 0xa0b   : > { %4703 = vmatprep.mubr.msk.bf16.mxu0 %vm822_vm0, %v2544_v54 }
 0xa0c   : > { %4704 = vmatmul.mubr.msk.bf16.gmra.mrb[112].mxu0 %vm822_vm0, %v2545_v63 }
 0xa0d   : > { %4763 = vmatprep.mubr.bf16.mxu0 %v5879_v28 }
 0xac7   : > { %v4693_v27 = vpop.f32.mrb[100].mxu0 }
 0xac8   : > { %v2635_v5 = vadd.f32 %v4693_v27, %v4055_v3  ;;  %v2626_v6 = vpop.f32.mrb[101].mxu0  ;;  %v5075_v27 = vld [vmem:[%s6117_s7 + $0x30] sm:$0xff]  }
 0xac9   : > { %v2627_v7 = vadd.f32 %v4055_v3, %v2626_v6  ;;  %v4694_v8 = vpop.f32.mrb[102].mxu0  ;;  %4727 = vmatprep.subr.bf16.mxu1 %v5075_v27 }
 0xaca   : > { %v2638_v9 = vadd.f32 %v4694_v8, %v4055_v3  ;;  %v2629_v10 = vpop.f32.mrb[103].mxu0  ;;  %v2691_v13 = vmax.f32 %v2635_v5, 0.0  ;;  %v5973_v5 = vld [vmem:[#allocation9 + $0x3] ss:$0 sm:$0xff] }
 0xacb   : > { %v2630_v11 = vadd.f32 %v4055_v3, %v2629_v10  ;;  %v2689_v4 = vmax.f32 %v2627_v7, 0.0 }
 0xacc   : > { %v2692_v16 = vmax.f32 %v2638_v9, 0.0 }
 0xacd   : > { %v2690_v42 = vmax.f32 %v2630_v11, 0.0 }
 0xace   : > { %v2706_v43 = vpack.c.bf16 %v2692_v16, %v2691_v13 }
 0xacf   : > { %v2705_v44 = vpack.c.bf16 %v2690_v42, %v2689_v4  ;;  %v4697_v45 = vpop.f32.mrb[104].mxu0 }
 0xad0   : > { %v2651_v46 = vadd.f32 %v4697_v45, %v4055_v3  ;;  %v2642_v29 = vpop.f32.mrb[105].mxu0 }
 0xad1   : > { %v2643_v30 = vadd.f32 %v4055_v3, %v2642_v29  ;;  %v4698_v28 = vpop.f32.mrb[106].mxu0  ;;  %4711 = vmatprep.mubr.msk.bf16.mxu1 %vm822_vm0, %v2705_v44 }
 0xad2   : > { %v2654_v47 = vadd.f32 %v4698_v28, %v4055_v3  ;;  %v2645_v48 = vpop.f32.mrb[107].mxu0  ;;  %4712 = vmatmul.mubr.msk.bf16.vlgmr.msra.gmra.mrb[76].mxu1 %vm822_vm0, %v2706_v43  ;;  %v2695_v51 = vmax.f32 %v2651_v46, 0.0 }
 0xad3   : > { %v2646_v50 = vadd.f32 %v4055_v3, %v2645_v48  ;;  %v2693_v1 = vmax.f32 %v2643_v30, 0.0  ;;  %4728 = vmatpush3.bf16.msra.mxu1 %v5075_v27 }
 0xad4   : > { %v2696_v0 = vmax.f32 %v2654_v47, 0.0 }
 0xad5   : > { %v2694_v17 = vmax.f32 %v2646_v50, 0.0 }
 0xad6   : > { %v2708_v18 = vpack.c.bf16 %v2696_v0, %v2695_v51 }
 0xad7   : > { %v2707_v12 = vpack.c.bf16 %v2694_v17, %v2693_v1  ;;  %v4701_v19 = vpop.f32.mrb[108].mxu0 }
 0xad8   : > { %v2667_v20 = vadd.f32 %v4701_v19, %v4055_v3  ;;  %v2658_v26 = vpop.f32.mrb[109].mxu0 }
 0xad9   : > { %v2659_v31 = vadd.f32 %v4055_v3, %v2658_v26  ;;  %v4702_v32 = vpop.f32.mrb[110].mxu0  ;;  %4715 = vmatprep.mubr.msk.bf16.mxu1 %vm822_vm0, %v2707_v12 }
 0xada   : > { %v2670_v33 = vadd.f32 %v4702_v32, %v4055_v3  ;;  %v2661_v34 = vpop.f32.mrb[111].mxu0  ;;  %4716 = vmatmul.mubr.msk.bf16.gmra.mrb[80].mxu1 %vm822_vm0, %v2708_v18  ;;  %v2699_v36 = vmax.f32 %v2667_v20, 0.0 }
 0xadb   : > { %v2662_v35 = vadd.f32 %v4055_v3, %v2661_v34  ;;  %v2697_v38 = vmax.f32 %v2659_v31, 0.0 }
 0xadc   : > { %v2700_v37 = vmax.f32 %v2670_v33, 0.0 }
 0xadd   : > { %v2698_v39 = vmax.f32 %v2662_v35, 0.0 }
 0xade   : > { %v2710_v40 = vpack.c.bf16 %v2700_v37, %v2699_v36 }
 0xadf   : > { %v2709_v41 = vpack.c.bf16 %v2698_v39, %v2697_v38  ;;  %v4705_v49 = vpop.f32.mrb[112].mxu0 }
 0xae0   : > { %v2683_v52 = vadd.f32 %v4705_v49, %v4055_v3  ;;  %v2674_v53 = vpop.f32.mrb[113].mxu0 }
 0xae1   : > { %v2675_v55 = vadd.f32 %v4055_v3, %v2674_v53  ;;  %v4706_v56 = vpop.f32.mrb[114].mxu0  ;;  %4719 = vmatprep.mubr.msk.bf16.mxu1 %vm822_vm0, %v2709_v41 }
 0xae2   : > { %v2686_v57 = vadd.f32 %v4706_v56, %v4055_v3  ;;  %v2677_v58 = vpop.f32.mrb[115].mxu0  ;;  %4720 = vmatmul.mubr.msk.bf16.gmra.mrb[84].mxu1 %vm822_vm0, %v2710_v40  ;;  %v2703_v60 = vmax.f32 %v2683_v52, 0.0 }
 0xae3   : > { %v2678_v59 = vadd.f32 %v4055_v3, %v2677_v58  ;;  %v2701_v62 = vmax.f32 %v2675_v55, 0.0  ;;  %v5076_v3 = vld [vmem:[%s6117_s7 + $0x38] sm:$0xff]  }
 0xae4   : > { %v2704_v61 = vmax.f32 %v2686_v57, 0.0  ;;  %4729 = vmatprep.subr.bf16.mxu1 %v5076_v3 }
 0xae5   : > { %v2702_v63 = vmax.f32 %v2678_v59, 0.0  ;;  %4730 = vmatpush3.bf16.msra.mxu1 %v5076_v3 }
 0xae6   : > { %v2712_v2 = vpack.c.bf16 %v2704_v61, %v2703_v60 }
 0xae7   : > { %v2711_v54 = vpack.c.bf16 %v2702_v63, %v2701_v62 }
 0xae9   : > { %4723 = vmatprep.mubr.msk.bf16.mxu1 %vm822_vm0, %v2711_v54 }
 0xaea   : > { %4724 = vmatmul.mubr.msk.bf16.gmra.mrb[88].mxu1 %vm822_vm0, %v2712_v2 }
 0xba5   : > { %v4713_v6 = vpop.f32.mrb[76].mxu1 }
 0xba6   : > { %v2802_v7 = vadd.f32 %v4713_v6, %v5973_v5  ;;  %v2793_v8 = vpop.f32.mrb[77].mxu1  ;;  %v5077_v6 = vld [vmem:[#allocation3 + $0x40] sm:$0xff]  }
 0xba7   : > { %v2794_v9 = vadd.f32 %v5973_v5, %v2793_v8  ;;  %v4714_v10 = vpop.f32.mrb[78].mxu1  ;;  %v5080_v8 = vld [vmem:[#allocation8 + $0x48] sm:$0xff]  }
 0xba8   : > { %v2805_v11 = vadd.f32 %v4714_v10, %v5973_v5  ;;  %v2796_v13 = vpop.f32.mrb[79].mxu1  ;;  %v2858_v4 = vmax.f32 %v2802_v7, 0.0  ;;  %v5078_v7 = vld [vmem:[#allocation3 + $0x48] sm:$0xff]  }
 0xba9   : > { %v2797_v16 = vadd.f32 %v5973_v5, %v2796_v13  ;;  %v2856_v43 = vmax.f32 %v2794_v9, 0.0 }
 0xbaa   : > { %v2859_v42 = vmax.f32 %v2805_v11, 0.0 }
 0xbab   : > { %v2857_v44 = vmax.f32 %v2797_v16, 0.0 }
 0xbac   : > { %v2873_v45 = vpack.c.bf16 %v2859_v42, %v2858_v4 }
 0xbad   : > { %v2872_v46 = vpack.c.bf16 %v2857_v44, %v2856_v43  ;;  %v4717_v29 = vpop.f32.mrb[80].mxu1 }
 0xbae   : > { %v2818_v30 = vadd.f32 %v4717_v29, %v5973_v5  ;;  %v2809_v28 = vpop.f32.mrb[81].mxu1 }
 0xbaf   : > { %v2810_v47 = vadd.f32 %v5973_v5, %v2809_v28  ;;  %v4718_v48 = vpop.f32.mrb[82].mxu1  ;;  %4731 = vmatprep.mubr.msk.bf16.mxu1 %vm822_vm0, %v2872_v46  ;;  %4747 = vmatprep.subr.bf16.mxu0 %v2872_v46 }
 0xbb0   : > { %v2821_v50 = vadd.f32 %v4718_v48, %v5973_v5  ;;  %v2812_v51 = vpop.f32.mrb[83].mxu1  ;;  %4732 = vmatmul.mubr.msk.bf16.vlgmr.msra.gmra.mrb[44].mxu1 %vm822_vm0, %v2873_v45  ;;  %4748 = vmatpush3.bf16.msra.mxu0 %v2872_v46  ;;  %v2862_v1 = vmax.f32 %v2818_v30, 0.0 }
 0xbb1   : > { %v2813_v0 = vadd.f32 %v5973_v5, %v2812_v51  ;;  %4749 = vmatprep.subr.bf16.mxu0 %v2873_v45  ;;  %v2860_v18 = vmax.f32 %v2810_v47, 0.0  ;;  %v5081_v51 = vld [vmem:[%s6117_s7 + $0x40] sm:$0xff]  }
 0xbb2   : > { %v2863_v17 = vmax.f32 %v2821_v50, 0.0 }
 0xbb3   : > { %v2861_v12 = vmax.f32 %v2813_v0, 0.0  ;;  %v4091_v0 = vld [vmem:[#allocation6 + $0x4] ss:$0 sm:$0xff] }
 0xbb4   : > { %v2875_v19 = vpack.c.bf16 %v2863_v17, %v2862_v1  ;;  %4750 = vmatpush3.bf16.msra.mxu0 %v2873_v45 }
 0xbb5   : > { %v2874_v20 = vpack.c.bf16 %v2861_v12, %v2860_v18  ;;  %v4721_v26 = vpop.f32.mrb[84].mxu1 }
 0xbb6   : > { %v2834_v31 = vadd.f32 %v4721_v26, %v5973_v5  ;;  %v2825_v32 = vpop.f32.mrb[85].mxu1 }
 0xbb7   : > { %v2826_v33 = vadd.f32 %v5973_v5, %v2825_v32  ;;  %v4722_v34 = vpop.f32.mrb[86].mxu1  ;;  %4735 = vmatprep.mubr.msk.bf16.mxu1 %vm822_vm0, %v2874_v20  ;;  %4751 = vmatprep.subr.bf16.mxu0 %v2874_v20 }
 0xbb8   : > { %v2837_v35 = vadd.f32 %v4722_v34, %v5973_v5  ;;  %v2828_v36 = vpop.f32.mrb[87].mxu1  ;;  %4736 = vmatmul.mubr.msk.bf16.gmra.mrb[48].mxu1 %vm822_vm0, %v2875_v19  ;;  %4752 = vmatpush3.bf16.msra.mxu0 %v2874_v20  ;;  %v2866_v38 = vmax.f32 %v2834_v31, 0.0 }
 0xbb9   : > { %v2829_v37 = vadd.f32 %v5973_v5, %v2828_v36  ;;  %4753 = vmatprep.subr.bf16.mxu0 %v2875_v19  ;;  %v2864_v40 = vmax.f32 %v2826_v33, 0.0 }
 0xbba   : > { %v2867_v39 = vmax.f32 %v2837_v35, 0.0 }
 0xbbb   : > { %v2865_v41 = vmax.f32 %v2829_v37, 0.0 }
 0xbbc   : > { %v2877_v49 = vpack.c.bf16 %v2867_v39, %v2866_v38  ;;  %4754 = vmatpush3.bf16.msra.mxu0 %v2875_v19 }
 0xbbd   : > { %v2876_v52 = vpack.c.bf16 %v2865_v41, %v2864_v40  ;;  %v4725_v53 = vpop.f32.mrb[88].mxu1  ;;  %v5082_v41 = vld [vmem:[%s6117_s7 + $0x48] sm:$0xff]  }
 0xbbe   : > { %v2850_v55 = vadd.f32 %v4725_v53, %v5973_v5  ;;  %v2841_v56 = vpop.f32.mrb[89].mxu1 }
 0xbbf   : > { %v2842_v57 = vadd.f32 %v5973_v5, %v2841_v56  ;;  %v4726_v58 = vpop.f32.mrb[90].mxu1  ;;  %4739 = vmatprep.mubr.msk.bf16.mxu1 %vm822_vm0, %v2876_v52  ;;  %4755 = vmatprep.subr.bf16.mxu0 %v2876_v52 }
 0xbc0   : > { %v2853_v59 = vadd.f32 %v4726_v58, %v5973_v5  ;;  %v2844_v60 = vpop.f32.mrb[91].mxu1  ;;  %4740 = vmatmul.mubr.msk.bf16.gmra.mrb[52].mxu1 %vm822_vm0, %v2877_v49  ;;  %4756 = vmatpush3.bf16.msra.mxu0 %v2876_v52  ;;  %v2870_v62 = vmax.f32 %v2850_v55, 0.0 }
 0xbc1   : > { %v2845_v61 = vadd.f32 %v5973_v5, %v2844_v60  ;;  %4757 = vmatprep.subr.bf16.mxu0 %v2877_v49  ;;  %v2868_v2 = vmax.f32 %v2842_v57, 0.0  ;;  %v5079_v5 = vld [vmem:[#allocation8 + $0x40] sm:$0xff]  }
 0xbc2   : > { %v2871_v63 = vmax.f32 %v2853_v59, 0.0  ;;  %4799 = vmatprep.subr.bf16.mxu1 %v5079_v5 }
 0xbc3   : > { %v2869_v54 = vmax.f32 %v2845_v61, 0.0  ;;  %4800 = vmatpush3.bf16.msra.mxu1 %v5079_v5 }
 0xbc4   : > { %v2879_v27 = vpack.c.bf16 %v2871_v63, %v2870_v62  ;;  %4758 = vmatpush3.bf16.msra.mxu0 %v2877_v49  ;;  %4801 = vmatprep.subr.bf16.mxu1 %v5080_v8 }
 0xbc5   : > { %v2878_v3 = vpack.c.bf16 %v2869_v54, %v2868_v2 }
 0xbc7   : > { %4743 = vmatprep.mubr.msk.bf16.mxu1 %vm822_vm0, %v2878_v3  ;;  %4759 = vmatprep.subr.bf16.mxu0 %v2878_v3 }
 0xbc8   : > { %4744 = vmatmul.mubr.msk.bf16.gmra.mrb[56].mxu1 %vm822_vm0, %v2879_v27  ;;  %4760 = vmatpush3.bf16.msra.mxu0 %v2878_v3 }
 0xbc9   : > { %4761 = vmatprep.subr.bf16.mxu0 %v2879_v27  ;;  %4802 = vmatpush3.bf16.msra.mxu1 %v5080_v8 }
 0xbca   : > { %4819 = vmatprep.subr.bf16.mxu1 %v5081_v51 }
 0xbcc   : > { %4762 = vmatpush3.bf16.msra.mxu0 %v2879_v27 }
 0xbcd   : > { %4779 = vmatprep.subr.bf16.mxu0 %v5077_v6 }
 0xbcf   : > { %4764 = vmatmul.mubr.bf16.vlgmr.msra.gmra.mrb[116].mxu0 %v5923_v21 }
 0xbd0   : > { %4767 = vmatprep.mubr.bf16.mxu0 %v5927_v22  ;;  %4780 = vmatpush3.bf16.msra.mxu0 %v5077_v6 }
 0xbd1   : > { %4781 = vmatprep.subr.bf16.mxu0 %v5078_v7 }
 0xbd4   : > { %4782 = vmatpush3.bf16.msra.mxu0 %v5078_v7 }
 0xbd7   : > { %4768 = vmatmul.mubr.bf16.gmra.mrb[120].mxu0 %v5931_v14 }
 0xbd8   : > { %4771 = vmatprep.mubr.bf16.mxu0 %v5935_v15 }
 0xbdf   : > { %4772 = vmatmul.mubr.bf16.gmra.mrb[124].mxu0 %v5939_v23 }
 0xbe0   : > { %4775 = vmatprep.mubr.bf16.mxu0 %v5943_v24 }
 0xbe7   : > { %4776 = vmatmul.mubr.bf16.gmra.mrb[128].mxu0 %v5947_v25 }
 0xca2   : > { %v4765_v21 = vpop.f32.mrb[116].mxu0 }
 0xca3   : > { %v3068_v22 = vpop.f32.mrb[117].mxu0 }
 0xca4   : > { %v4766_v9 = vpop.f32.mrb[118].mxu0 }
 0xca5   : > { %v3132_v10 = vpack.c.bf16 %v4766_v9, %v4765_v21  ;;  %v3071_v11 = vpop.f32.mrb[119].mxu0 }
 0xca6   : > { %v3131_v14 = vpack.c.bf16 %v3071_v11, %v3068_v22 }
 0xca8   : > { %4783 = vmatprep.mubr.msk.bf16.mxu0 %vm822_vm0, %v3131_v14 }
 0xca9   : > { %4784 = vmatmul.mubr.msk.bf16.vlgmr.msra.gmra.mrb[132].mxu0 %vm822_vm0, %v3132_v10 }
 0xcaa   : > { %v4769_v15 = vpop.f32.mrb[120].mxu0 }
 0xcab   : > { %v3084_v23 = vpop.f32.mrb[121].mxu0 }
 0xcac   : > { %v4770_v24 = vpop.f32.mrb[122].mxu0 }
 0xcad   : > { %v3134_v25 = vpack.c.bf16 %v4770_v24, %v4769_v15  ;;  %v3087_v13 = vpop.f32.mrb[123].mxu0 }
 0xcae   : > { %v3133_v16 = vpack.c.bf16 %v3087_v13, %v3084_v23 }
 0xcb0   : > { %4787 = vmatprep.mubr.msk.bf16.mxu0 %vm822_vm0, %v3133_v16 }
 0xcb1   : > { %4788 = vmatmul.mubr.msk.bf16.gmra.mrb[136].mxu0 %vm822_vm0, %v3134_v25 }
 0xcb2   : > { %v4773_v4 = vpop.f32.mrb[124].mxu0 }
 0xcb3   : > { %v3100_v42 = vpop.f32.mrb[125].mxu0 }
 0xcb4   : > { %v4774_v43 = vpop.f32.mrb[126].mxu0 }
 0xcb5   : > { %v3136_v44 = vpack.c.bf16 %v4774_v43, %v4773_v4  ;;  %v3103_v45 = vpop.f32.mrb[127].mxu0 }
 0xcb6   : > { %v3135_v46 = vpack.c.bf16 %v3103_v45, %v3100_v42 }
 0xcb8   : > { %4791 = vmatprep.mubr.msk.bf16.mxu0 %vm822_vm0, %v3135_v46 }
 0xcb9   : > { %4792 = vmatmul.mubr.msk.bf16.gmra.mrb[140].mxu0 %vm822_vm0, %v3136_v44 }
 0xcba   : > { %v4777_v29 = vpop.f32.mrb[128].mxu0 }
 0xcbb   : > { %v3116_v30 = vpop.f32.mrb[129].mxu0 }
 0xcbc   : > { %v4778_v28 = vpop.f32.mrb[130].mxu0 }
 0xcbd   : > { %v3138_v47 = vpack.c.bf16 %v4778_v28, %v4777_v29  ;;  %v3119_v48 = vpop.f32.mrb[131].mxu0 }
 0xcbe   : > { %v3137_v50 = vpack.c.bf16 %v3119_v48, %v3116_v30  ;;  %v4102_v30 = vld [vmem:[#allocation9 + $0x4] ss:$0 sm:$0xff] }
 0xcc0   : > { %4795 = vmatprep.mubr.msk.bf16.mxu0 %vm822_vm0, %v3137_v50 }
 0xcc1   : > { %4796 = vmatmul.mubr.msk.bf16.gmra.mrb[144].mxu0 %vm822_vm0, %v3138_v47 }
 0xd7c   : > { %v4785_v1 = vpop.f32.mrb[132].mxu0 }
 0xd7d   : > { %v3228_v17 = vadd.f32 %v4785_v1, %v4091_v0  ;;  %v3219_v18 = vpop.f32.mrb[133].mxu0 }
 0xd7e   : > { %v3220_v12 = vadd.f32 %v4091_v0, %v3219_v18  ;;  %v4786_v19 = vpop.f32.mrb[134].mxu0 }
 0xd7f   : > { %v3231_v20 = vadd.f32 %v4786_v19, %v4091_v0  ;;  %v3222_v26 = vpop.f32.mrb[135].mxu0  ;;  %v3284_v32 = vmax.f32 %v3228_v17, 0.0 }
 0xd80   : > { %v3223_v31 = vadd.f32 %v4091_v0, %v3222_v26  ;;  %v3282_v34 = vmax.f32 %v3220_v12, 0.0 }
 0xd81   : > { %v3285_v33 = vmax.f32 %v3231_v20, 0.0 }
 0xd82   : > { %v3283_v35 = vmax.f32 %v3223_v31, 0.0 }
 0xd83   : > { %v3299_v36 = vpack.c.bf16 %v3285_v33, %v3284_v32 }
 0xd84   : > { %v3298_v37 = vpack.c.bf16 %v3283_v35, %v3282_v34  ;;  %v4789_v38 = vpop.f32.mrb[136].mxu0 }
 0xd85   : > { %v3244_v39 = vadd.f32 %v4789_v38, %v4091_v0  ;;  %v3235_v40 = vpop.f32.mrb[137].mxu0 }
 0xd86   : > { %v3236_v49 = vadd.f32 %v4091_v0, %v3235_v40  ;;  %v4790_v52 = vpop.f32.mrb[138].mxu0  ;;  %4803 = vmatprep.mubr.msk.bf16.mxu1 %vm822_vm0, %v3298_v37 }
 0xd87   : > { %v3247_v53 = vadd.f32 %v4790_v52, %v4091_v0  ;;  %v3238_v55 = vpop.f32.mrb[139].mxu0  ;;  %4804 = vmatmul.mubr.msk.bf16.vlgmr.msra.gmra.mrb[92].mxu1 %vm822_vm0, %v3299_v36  ;;  %v3288_v57 = vmax.f32 %v3244_v39, 0.0 }
 0xd88   : > { %v3239_v56 = vadd.f32 %v4091_v0, %v3238_v55  ;;  %4820 = vmatpush3.bf16.msra.mxu1 %v5081_v51  ;;  %v3286_v59 = vmax.f32 %v3236_v49, 0.0 }
 0xd89   : > { %v3289_v58 = vmax.f32 %v3247_v53, 0.0  ;;  %4821 = vmatprep.subr.bf16.mxu1 %v5082_v41 }
 0xd8a   : > { %v3287_v60 = vmax.f32 %v3239_v56, 0.0 }
 0xd8b   : > { %v3301_v61 = vpack.c.bf16 %v3289_v58, %v3288_v57 }
 0xd8c   : > { %v3300_v62 = vpack.c.bf16 %v3287_v60, %v3286_v59  ;;  %v4793_v63 = vpop.f32.mrb[140].mxu0  ;;  %4822 = vmatpush3.bf16.msra.mxu1 %v5082_v41 }
 0xd8d   : > { %v3260_v2 = vadd.f32 %v4793_v63, %v4091_v0  ;;  %v3251_v54 = vpop.f32.mrb[141].mxu0 }
 0xd8e   : > { %v3252_v27 = vadd.f32 %v4091_v0, %v3251_v54  ;;  %v4794_v3 = vpop.f32.mrb[142].mxu0  ;;  %4807 = vmatprep.mubr.msk.bf16.mxu1 %vm822_vm0, %v3300_v62 }
 0xd8f   : > { %v3263_v6 = vadd.f32 %v4794_v3, %v4091_v0  ;;  %v3254_v7 = vpop.f32.mrb[143].mxu0  ;;  %4808 = vmatmul.mubr.msk.bf16.gmra.mrb[96].mxu1 %vm822_vm0, %v3301_v61  ;;  %v3292_v8 = vmax.f32 %v3260_v2, 0.0 }
 0xd90   : > { %v3255_v5 = vadd.f32 %v4091_v0, %v3254_v7  ;;  %v3290_v22 = vmax.f32 %v3252_v27, 0.0 }
 0xd91   : > { %v3293_v21 = vmax.f32 %v3263_v6, 0.0 }
 0xd92   : > { %v3291_v9 = vmax.f32 %v3255_v5, 0.0 }
 0xd93   : > { %v3303_v10 = vpack.c.bf16 %v3293_v21, %v3292_v8 }
 0xd94   : > { %v3302_v11 = vpack.c.bf16 %v3291_v9, %v3290_v22  ;;  %v4797_v14 = vpop.f32.mrb[144].mxu0 }
 0xd95   : > { %v3276_v15 = vadd.f32 %v4797_v14, %v4091_v0  ;;  %v3267_v23 = vpop.f32.mrb[145].mxu0 }
 0xd96   : > { %v3268_v24 = vadd.f32 %v4091_v0, %v3267_v23  ;;  %v4798_v25 = vpop.f32.mrb[146].mxu0  ;;  %4811 = vmatprep.mubr.msk.bf16.mxu1 %vm822_vm0, %v3302_v11 }
 0xd97   : > { %v3279_v13 = vadd.f32 %v4798_v25, %v4091_v0  ;;  %v3270_v16 = vpop.f32.mrb[147].mxu0  ;;  %4812 = vmatmul.mubr.msk.bf16.gmra.mrb[100].mxu1 %vm822_vm0, %v3303_v10  ;;  %v3296_v42 = vmax.f32 %v3276_v15, 0.0 }
 0xd98   : > { %v3271_v4 = vadd.f32 %v4091_v0, %v3270_v16  ;;  %v3294_v44 = vmax.f32 %v3268_v24, 0.0 }
 0xd99   : > { %v3297_v43 = vmax.f32 %v3279_v13, 0.0 }
 0xd9a   : > { %v3295_v45 = vmax.f32 %v3271_v4, 0.0  ;;  %v5348_v4 = vmov 0.0  }
 0xd9b   : > { %v3305_v46 = vpack.c.bf16 %v3297_v43, %v3296_v42  ;;  %4839 = vmatprep.subr.bf16.mxu0 %v5348_v4  ;;  %4855 = vmatprep.mubr.msk.bf16.mxu0 %vm5349_vm1, %v5348_v4 }
 0xd9c   : > { %v3304_v29 = vpack.c.bf16 %v3295_v45, %v3294_v44 }
 0xd9e   : > { %4815 = vmatprep.mubr.msk.bf16.mxu1 %vm822_vm0, %v3304_v29 }
 0xd9f   : > { %4816 = vmatmul.mubr.msk.bf16.gmra.mrb[104].mxu1 %vm822_vm0, %v3305_v46 }
 0xe5a   : > { %v4805_v28 = vpop.f32.mrb[92].mxu1 }
 0xe5b   : > { %v3395_v47 = vadd.f32 %v4805_v28, %v4102_v30  ;;  %v3386_v48 = vpop.f32.mrb[93].mxu1 }
 0xe5c   : > { %v3387_v50 = vadd.f32 %v4102_v30, %v3386_v48  ;;  %v4806_v51 = vpop.f32.mrb[94].mxu1 }
 0xe5d   : > { %v3398_v1 = vadd.f32 %v4806_v51, %v4102_v30  ;;  %v3389_v17 = vpop.f32.mrb[95].mxu1  ;;  %v3451_v0 = vmax.f32 %v3395_v47, 0.0 }
 0xe5e   : > { %v3390_v18 = vadd.f32 %v4102_v30, %v3389_v17  ;;  %v3449_v19 = vmax.f32 %v3387_v50, 0.0 }
 0xe5f   : > { %v3452_v12 = vmax.f32 %v3398_v1, 0.0 }
 0xe60   : > { %v3450_v20 = vmax.f32 %v3390_v18, 0.0 }
 0xe61   : > { %v3466_v26 = vpack.c.bf16 %v3452_v12, %v3451_v0 }
 0xe62   : > { %v3465_v31 = vpack.c.bf16 %v3450_v20, %v3449_v19  ;;  %v4809_v32 = vpop.f32.mrb[96].mxu1 }
 0xe63   : > { %v3411_v33 = vadd.f32 %v4809_v32, %v4102_v30  ;;  %v3402_v34 = vpop.f32.mrb[97].mxu1 }
 0xe64   : > { %v3403_v35 = vadd.f32 %v4102_v30, %v3402_v34  ;;  %v4810_v36 = vpop.f32.mrb[98].mxu1  ;;  %4823 = vmatprep.mubr.msk.bf16.mxu1 %vm822_vm0, %v3465_v31 }
 0xe65   : > { %v3414_v37 = vadd.f32 %v4810_v36, %v4102_v30  ;;  %v3405_v38 = vpop.f32.mrb[99].mxu1  ;;  %4824 = vmatmul.mubr.msk.bf16.vlgmr.msra.gmra.mrb[44].mxu1 %vm822_vm0, %v3466_v26  ;;  %v3455_v40 = vmax.f32 %v3411_v33, 0.0 }
 0xe66   : > { %v3406_v39 = vadd.f32 %v4102_v30, %v3405_v38  ;;  %v3453_v49 = vmax.f32 %v3403_v35, 0.0  ;;  %v3627_v35 = vld [vmem:[%s552_s17] sm:$0xff]  ;;  %v5084_v38 = vld [vmem:[%s6119_s9 + $0x8] sm:$0xff]  }
 0xe67   : > { %v3456_v41 = vmax.f32 %v3414_v37, 0.0  ;;  %v3628_v36 = vpack.c.bf16 %v3627_v35, %v3627_v35  ;;  %v5083_v37 = vld [vmem:[%s6119_s9] sm:$0xff]  }
 0xe68   : > { %v3454_v52 = vmax.f32 %v3406_v39, 0.0  ;;  %v4127_v39 = vld [vmem:[%s6118_s8] ss:$0 sm:$0xff] }
 0xe69   : > { %v3468_v53 = vpack.c.bf16 %v3456_v41, %v3455_v40 }
 0xe6a   : > { %v3467_v55 = vpack.c.bf16 %v3454_v52, %v3453_v49  ;;  %v4813_v56 = vpop.f32.mrb[100].mxu1 }
 0xe6b   : > { %v3427_v57 = vadd.f32 %v4813_v56, %v4102_v30  ;;  %v3418_v58 = vpop.f32.mrb[101].mxu1 }
 0xe6c   : > { %v3419_v59 = vadd.f32 %v4102_v30, %v3418_v58  ;;  %v4814_v60 = vpop.f32.mrb[102].mxu1  ;;  %4827 = vmatprep.mubr.msk.bf16.mxu1 %vm822_vm0, %v3467_v55 }
 0xe6d   : > { %v3430_v61 = vadd.f32 %v4814_v60, %v4102_v30  ;;  %v3421_v62 = vpop.f32.mrb[103].mxu1  ;;  %4828 = vmatmul.mubr.msk.bf16.gmra.mrb[48].mxu1 %vm822_vm0, %v3468_v53  ;;  %v3459_v2 = vmax.f32 %v3427_v57, 0.0  ;;  %v4128_v57 = vld [vmem:[%s6167_s30] ss:$0 sm:$0xff] }
 0xe6e   : > { %v3422_v63 = vadd.f32 %v4102_v30, %v3421_v62  ;;  %v3457_v27 = vmax.f32 %v3419_v59, 0.0 }
 0xe6f   : > { %v3460_v54 = vmax.f32 %v3430_v61, 0.0 }
 0xe70   : > { %v3458_v3 = vmax.f32 %v3422_v63, 0.0 }
 0xe71   : > { %v3470_v6 = vpack.c.bf16 %v3460_v54, %v3459_v2 }
 0xe72   : > { %v3469_v7 = vpack.c.bf16 %v3458_v3, %v3457_v27  ;;  %v4817_v5 = vpop.f32.mrb[104].mxu1 }
 0xe73   : > { %v3443_v8 = vadd.f32 %v4817_v5, %v4102_v30  ;;  %v3434_v21 = vpop.f32.mrb[105].mxu1 }
 0xe74   : > { %v3435_v22 = vadd.f32 %v4102_v30, %v3434_v21  ;;  %v4818_v9 = vpop.f32.mrb[106].mxu1  ;;  %4831 = vmatprep.mubr.msk.bf16.mxu1 %vm822_vm0, %v3469_v7 }
 0xe75   : > { %v3446_v10 = vadd.f32 %v4818_v9, %v4102_v30  ;;  %v3437_v11 = vpop.f32.mrb[107].mxu1  ;;  %4832 = vmatmul.mubr.msk.bf16.gmra.mrb[52].mxu1 %vm822_vm0, %v3470_v6  ;;  %v3463_v15 = vmax.f32 %v3443_v8, 0.0 }
 0xe76   : > { %v3438_v14 = vadd.f32 %v4102_v30, %v3437_v11  ;;  %v3461_v24 = vmax.f32 %v3435_v22, 0.0 }
 0xe77   : > { %v3464_v23 = vmax.f32 %v3446_v10, 0.0 }
 0xe78   : > { %v3462_v25 = vmax.f32 %v3438_v14, 0.0 }
 0xe79   : > { %v3472_v13 = vpack.c.bf16 %v3464_v23, %v3463_v15 }
 0xe7a   : > { %v3471_v16 = vpack.c.bf16 %v3462_v25, %v3461_v24 }
 0xe7c   : > { %4835 = vmatprep.mubr.msk.bf16.mxu1 %vm822_vm0, %v3471_v16 }
 0xe7d   : > { %4836 = vmatmul.mubr.msk.bf16.gmra.mrb[56].mxu1 %vm822_vm0, %v3472_v13 }
 0xf38   : > { %v4825_v42 = vpop.f32.mrb[44].mxu1 }
 0xf39   : > { %v3548_v43 = vpop.f32.mrb[45].mxu1 }
 0xf3a   : > { %v4826_v44 = vpop.f32.mrb[46].mxu1 }
 0xf3b   : > { %v3630_v45 = vpack.c.bf16 %v4826_v44, %v4825_v42  ;;  %v3551_v46 = vpop.f32.mrb[47].mxu1 }
 0xf3c   : > { %v3629_v29 = vpack.c.bf16 %v3551_v46, %v3548_v43 }
 0xf3e   : > { %4840 = vmatpush3.bf16.msra.mxu0 %v3629_v29 }
 0xf3f   : > { %4841 = vmatprep.subr.bf16.mxu0 %v5348_v4 }
 0xf40   : > { %v4829_v30 = vpop.f32.mrb[48].mxu1 }
 0xf41   : > { %v3564_v28 = vpop.f32.mrb[49].mxu1 }
 0xf42   : > { %v4830_v47 = vpop.f32.mrb[50].mxu1  ;;  %4842 = vmatpush3.bf16.msra.mxu0 %v3630_v45 }
 0xf43   : > { %v3632_v48 = vpack.c.bf16 %v4830_v47, %v4829_v30  ;;  %v3567_v50 = vpop.f32.mrb[51].mxu1  ;;  %4843 = vmatprep.subr.bf16.mxu0 %v5348_v4 }
 0xf44   : > { %v3631_v51 = vpack.c.bf16 %v3567_v50, %v3564_v28 }
 0xf46   : > { %4844 = vmatpush3.bf16.msra.mxu0 %v3631_v51 }
 0xf47   : > { %4845 = vmatprep.subr.bf16.mxu0 %v5348_v4 }
 0xf48   : > { %v4833_v1 = vpop.f32.mrb[52].mxu1 }
 0xf49   : > { %v3580_v17 = vpop.f32.mrb[53].mxu1 }
 0xf4a   : > { %v4834_v18 = vpop.f32.mrb[54].mxu1  ;;  %4846 = vmatpush3.bf16.msra.mxu0 %v3632_v48 }
 0xf4b   : > { %v3634_v0 = vpack.c.bf16 %v4834_v18, %v4833_v1  ;;  %v3583_v12 = vpop.f32.mrb[55].mxu1  ;;  %4847 = vmatprep.subr.bf16.mxu0 %v5348_v4 }
 0xf4c   : > { %v3633_v19 = vpack.c.bf16 %v3583_v12, %v3580_v17 }
 0xf4e   : > { %4848 = vmatpush3.bf16.msra.mxu0 %v3633_v19 }
 0xf4f   : > { %4849 = vmatprep.subr.bf16.mxu0 %v5348_v4 }
 0xf50   : > { %v4837_v20 = vpop.f32.mrb[56].mxu1 }
 0xf51   : > { %v3596_v26 = vpop.f32.mrb[57].mxu1 }
 0xf52   : > { %v4838_v31 = vpop.f32.mrb[58].mxu1  ;;  %4850 = vmatpush3.bf16.msra.mxu0 %v3634_v0 }
 0xf53   : > { %v3636_v32 = vpack.c.bf16 %v4838_v31, %v4837_v20  ;;  %v3599_v33 = vpop.f32.mrb[59].mxu1  ;;  %4851 = vmatprep.subr.bf16.mxu0 %v5348_v4 }
 0xf54   : > { %v3635_v34 = vpack.c.bf16 %v3599_v33, %v3596_v26 }
 0xf56   : > { %4852 = vmatpush3.bf16.msra.mxu0 %v3635_v34 }
 0xf57   : > { %4853 = vmatprep.subr.bf16.mxu0 %v5348_v4 }
 0xf5a   : > { %4854 = vmatpush3.bf16.msra.mxu0 %v3636_v32 }
 0xf5b   : > { %4859 = vmatprep.subr.bf16.mxu0 %v5348_v4 }
 0xf5d   : > { %4856 = vmatmul.mubr.bf16.vlgmr.msra.gmra.mrb[148].mxu0 %v3628_v36 }
 0xf5e   : > { %4863 = vmatprep.mubr.msk.bf16.mxu0 %vm5349_vm1, %v5348_v4  ;;  %4860 = vmatpush3.bf16.msra.mxu0 %v5083_v37 }
 0xf5f   : > { %4861 = vmatprep.subr.bf16.mxu0 %v5348_v4 }
 0xf62   : > { %4862 = vmatpush3.bf16.msra.mxu0 %v5084_v38 }
0x1030   : > { %v3678_v40 = vpop.f32.mrb[148].mxu0 }
0x1031   : > { %v3679_v41 = vadd.f32 %v4127_v39, %v3678_v40  ;;  %v4857_v49 = vpop.f32.mrb[149].mxu0 }
0x1032   : > { %v3681_v52 = vpop.f32.mrb[150].mxu0 }
0x1033   : > { %v3684_v53 = vmax.f32 %v3679_v41, 0.0  ;;  %v4858_v55 = vpop.f32.mrb[151].mxu0 }
0x1035   : > { %v3685_v56 = vpack.c.bf16 %v3684_v53, %v3684_v53 }
0x1037   : > { %4864 = vmatmul.mubr.msk.bf16.vlgmr.msra.gmra.mrb[152].mxu0 %vm822_vm0, %v3685_v56 }
0x110a   : > { %v3746_v58 = vpop.f32.mrb[152].mxu0 }
0x110b   : > { %v3747_v59 = vadd.f32 %v4128_v57, %v3746_v58  ;;  %v4865_v60 = vpop.f32.mrb[153].mxu0 }
0x110c   : > { %v3749_v61 = vpop.f32.mrb[154].mxu0 }
0x110d   : > { %3752 = vmax.xlane.f32.xlu0 %v3747_v59  ;;  %v4866_v62 = vpop.f32.mrb[155].mxu0 }
0x119a   : > { %v3753_v63 = vpop.xlane.xlu0 %3752 }
0x119b   : > { %v3754_v2 = vsub.f32 %v3747_v59, %v3753_v63 }
0x119d   : > { %v3755_v54 = vmul.f32 1.442695, %v3754_v2 }
0x119f   : > { %5085 = vpow2.f32 %v3755_v54 }
0x11a9   : > { %v5086_v27 = vpop.eup %5085 }
0x11aa   : > { %3757 = vadd.xlane.f32.xlu0 %v5086_v27 }
0x1237   : > { %v3758_v3 = vpop.xlane.xlu0 %3757 }
0x1238   : > { %5087 = vlog2.f32 %v3758_v3 }
0x1242   : > { %v5088_v6 = vpop.eup %5087 }
0x1243   : > { %v3760_v7 = vmul.f32 0.6931472, %v5088_v6 }
0x1245   : > { %v3761_v5 = vsub.f32 %v3754_v2, %v3760_v7 }
0x1247   : > { %3762 = vst [vmem:[%s599_s16] sm:$0xff] %v3761_v5 }
0x1248   : > { %5250 = shalt.err (!%p5247_p11)
}
0x1249   : > { %s5251_s17 = scalar_lea.hbm %s6058_s15, 128  ;;  %s5255_s30 = scalar_lea.hbm %s6170_s29, 256 }
0x124a   : > { %p5252_p9 = scmp.ne.s32.totalorder %s6058_s15, %s5251_s17  ;;  %p5256_p3 = scmp.lt.u32.totalorder %s6058_s15, %s6170_s29 }
0x124b   : > { %p5257_p8 = scmp.lt.u32.totalorder %s5255_s30, %s5251_s17  ;;  %p5259_p13 = scmp.lt.u32.totalorder %s5251_s17, %s6058_s15 }
0x124c   : > { %p5253_p12 = pnand %p5252_p9, %p6171_p6 }
0x124d   : > { %p5258_p7 = por %p5257_p8, %p5256_p3 }
0x124e   : > { %p5254_p0 = pneg %p5253_p12 }
0x124f   : > { %p5260_p1 = por %p5259_p13, %p5258_p7 }
0x1251   : > { %p5261_p4 = pnand %p5260_p1, %p5254_p0 }
0x1253   : > { %5264 = shalt.err (!%p5261_p4)
}
0x1254   : > { %4953 = dma.vmem_to_hbm [thread:$0]  (%p6171_p6), %s6060_s28, 128, %s6058_s15, %s3764_s11  }
0x1255 PF: > { %s6172_s3 = sld [smem:[#allocation18_spill]]  ;;  %s6173_s20 = sld [smem:[#allocation25_spill]] }
0x125b   : > { %s3789_s16 = sand.u32 1, %s6172_s3   ;;  %p6174_p2 = scmp.ne.s32.totalorder %s6173_s20, 0 }
0x125c   : > { %s3790_s13 = scalar_lea.sflag [#allocation5], %s3789_s16 }
0x125d   : > { %p4969_p10 = pnand %p3925_p5, %p6174_p2 }
0x125f   : > { %5310 = dma.done.wait (!%p4969_p10), %s3790_s13, 128  }
0x1260   : > { %5312 = vsyncadd (!%p4969_p10), %s3790_s13, 4294967168  ;;  %s6175_s23 = sld [smem:[#allocation21_spill]]  ;;  %s6176_s17 = sld [smem:[#allocation19_spill]] }
0x1261   : > { %s6177_s18 = sld [smem:[#allocation20_spill]]  ;;  %s6178_s19 = sld [smem:[#allocation23_spill]] }
0x1262   : > { %s6179_s12 = sld [smem:[#allocation22_spill]]  ;;  %s6180_s20 = smov %s5331_s21 }
0x1263   : > { %s6181_s21 = smov %s5335_s22 }
0x1266   : > { %p24_p6 = scmp.ge.s32.totalorder %s6175_s23, 4  }
0x1268   : > { %s6182_s22 = smov %s6179_s12  ;;  %26 = sbr.rel (!%p24_p6) target bundleno = 13 (0xd), region = 188 }
0x126f   :  { %3795 = vsyncpa [#allocation4], 1 }
0x1270   :  { %3797 = vsyncpa [#allocation4 + $0x1], 1 }
0x1271   :  { %3798 = vsyncpa [#allocation7], 1 }
0x1272   :  { %3799 = vsyncpa [#allocation10], 1 }
0x1273   :  { %3800 = vsyncpa [#allocation5], 1 }
0x1274   :  { %3802 = vsyncpa [#allocation5 + $0x1], 1 }

</bundles_post_ra>
